<compile_context>
chip_gen: v7x
topology: tpu7x:2x2x1
jax: 0.10.0
libtpu: 0.0.40
codegen_flags: <defaults>
</compile_context>

<pallas_src>
import jax
import jax.numpy as jnp
from jax.experimental import pallas as pl
from jax.experimental.pallas import tpu as pltpu

_BIG_NEG = -1e9


def _mpnn_kernel(
    z_ref, edge_ref, graph_ref, adj_ref,
    w12_ref, b12_ref, wg_ref, bgbe_ref,
    we_ref, wo1_ref, wo2_ref, bo_ref,
    out_ref,
    msg1p_sc, msg2_sc, acc_sc,
):
  """Grid = (batch, sender_tile).  One sender tile per step."""
  it = pl.program_id(1)
  n_tiles = pl.num_programs(1)
  tile_i, n, h = edge_ref.shape
  mid = acc_sc.shape[-1]

  @pl.when(it == 0)
  def _init():
    # Per-node projections (computed once per batch element, kept in scratch).
    z = z_ref[...]                                               # bf16 [N, 2H]
    msg12 = jnp.dot(z, w12_ref[...],
                    preferred_element_type=jnp.float32) + b12_ref[...]
    msgg = jnp.dot(graph_ref[...], wg_ref[...],
                   preferred_element_type=jnp.float32) + bgbe_ref[...]  # [1, MID]
    # Fold all per-receiver-constant terms (msg_g + b_g + b_e + b_1) into msg1.
    msg1p_sc[...] = msg12[:, :mid] + msgg
    msg2_sc[...] = msg12[:, mid:]
    acc_sc[...] = jnp.full(acc_sc.shape, _BIG_NEG, dtype=jnp.float32)

  # Edge messages for this sender tile (bf16 MXU, f32 accumulate).
  edge = edge_ref[...].reshape(tile_i * n, h)                     # bf16
  msge = jnp.dot(edge, we_ref[...],
                 preferred_element_type=jnp.float32).reshape(tile_i, n, mid)

  i0 = pl.multiple_of(it * tile_i, 8)
  msg2_tile = msg2_sc[pl.ds(i0, tile_i), :]                       # [T, MID]

  # msgs[ti, j, :] = msg1p[j] + msg2[i0+ti] + msge[ti, j]
  msgs = msg1p_sc[...][None, :, :] + msg2_tile[:, None, :] + msge

  # Fused masked max over this tile's sender axis, then running max.
  adj = adj_ref[...]                                              # [T, N]
  tile_max = jnp.max(jnp.where(adj[:, :, None] > 0.5, msgs, _BIG_NEG), axis=0)
  acc_sc[...] = jnp.maximum(acc_sc[...], tile_max)

  @pl.when(it == n_tiles - 1)
  def _finalize():
    h1 = jnp.dot(z_ref[...], wo1_ref[...],
                 preferred_element_type=jnp.float32)
    h2 = jnp.dot(acc_sc[...].astype(jnp.bfloat16), wo2_ref[...],
                 preferred_element_type=jnp.float32)
    out_ref[...] = jnp.maximum(h1 + h2 + bo_ref[...], 0.0)        # relu


def _pick_tile_i(n, cap=32):
  """Largest multiple-of-8 divisor of n that is <= cap, else n (single tile)."""
  cands = [t for t in range(8, min(cap, n) + 1, 8) if n % t == 0]
  return max(cands) if cands else n


def mpnn_processor(node_fts, edge_fts, graph_fts, adj_mat, hidden, params,
                   *, tile_i=None):
  """Runs the MPNN processor. Returns (node_embeddings, None)."""
  b, n, h = node_fts.shape
  mid = params["w1"].shape[1]
  out = params["wo1"].shape[1]

  if tile_i is None:
    tile_i = _pick_tile_i(n)
  assert n % tile_i == 0, "tile_i must divide N"
  assert tile_i % 8 == 0 or tile_i == n, "tile_i must be a multiple of 8 (or N)"
  n_tiles = n // tile_i

  f32, bf16 = jnp.float32, jnp.bfloat16

  # Activations: pre-concatenate z (no in-kernel concat), bf16 matmul operands.
  z = jnp.concatenate([node_fts, hidden], axis=-1).astype(bf16)   # [B, N, 2H]
  edge_bf = edge_fts.astype(bf16)                                 # [B, N, N, H]
  graph_bf = graph_fts.reshape(b, 1, h).astype(bf16)              # [B, 1, H]
  adj = adj_mat.astype(f32)                                       # [B, N, N]

  # Weights: fuse w1/w2 into one GEMM, fold constant biases, cast to bf16.
  w12 = jnp.concatenate([params["w1"], params["w2"]], axis=1).astype(bf16)
  b12 = jnp.concatenate([params["b1"], params["b2"]]).reshape(1, -1).astype(f32)
  wg = params["wg"].astype(bf16)
  bgbe = (params["bg"] + params["be"]).reshape(1, -1).astype(f32)
  we = params["we"].astype(bf16)
  wo1 = params["wo1"].astype(bf16)
  wo2 = params["wo2"].astype(bf16)
  bo = (params["bo1"] + params["bo2"]).reshape(1, -1).astype(f32)

  weight_args = (w12, b12, wg, bgbe, we, wo1, wo2, bo)

  def full2d(arr):
    return pl.BlockSpec(arr.shape, lambda bb, it: (0, 0))

  grid_spec = pltpu.PrefetchScalarGridSpec(
      num_scalar_prefetch=0,
      grid=(b, n_tiles),
      in_specs=[
          pl.BlockSpec((None, n, 2 * h), lambda bb, it: (bb, 0, 0)),        # z
          pl.BlockSpec((None, tile_i, n, h), lambda bb, it: (bb, it, 0, 0)),  # edge
          pl.BlockSpec((None, 1, h), lambda bb, it: (bb, 0, 0)),            # graph
          pl.BlockSpec((None, tile_i, n), lambda bb, it: (bb, it, 0)),      # adj
      ] + [full2d(w) for w in weight_args],
      out_specs=pl.BlockSpec((None, n, out), lambda bb, it: (bb, 0, 0)),
      scratch_shapes=[
          pltpu.VMEM((n, mid), f32),   # msg1 + folded constants
          pltpu.VMEM((n, mid), f32),   # msg2 (sender-side)
          pltpu.VMEM((n, mid), f32),   # running-max accumulator
      ],
  )

  node_emb = pl.pallas_call(
      _mpnn_kernel,
      out_shape=jax.ShapeDtypeStruct((b, n, out), f32),
      grid_spec=grid_spec,
      compiler_params=pltpu.CompilerParams(
          dimension_semantics=("parallel", "arbitrary"),
          vmem_limit_bytes=32 * 1024 * 1024),
  )(z, edge_bf, graph_bf, adj, *weight_args)

  return node_emb, None  # edge embeddings are None for MPNN


def mpnn_reference(node_fts, edge_fts, graph_fts, adj_mat, hidden, params):
  """Pure-JAX reference (mirrors the kernel's bf16 matmul precision)."""
  bf = lambda x: x.astype(jnp.bfloat16)
  z = jnp.concatenate([node_fts, hidden], axis=-1)
  msg1 = jnp.einsum("bnh,hm->bnm", bf(z), bf(params["w1"]),
                    preferred_element_type=jnp.float32) + params["b1"]
  msg2 = jnp.einsum("bnh,hm->bnm", bf(z), bf(params["w2"]),
                    preferred_element_type=jnp.float32) + params["b2"]
  msge = jnp.einsum("bijh,hm->bijm", bf(edge_fts), bf(params["we"]),
                    preferred_element_type=jnp.float32) + params["be"]
  msgg = jnp.einsum("bh,hm->bm", bf(graph_fts), bf(params["wg"]),
                    preferred_element_type=jnp.float32) + params["bg"]
  msgs = (msg1[:, None, :, :] + msg2[:, :, None, :] + msge
          + msgg[:, None, None, :])
  masked = jnp.where(adj_mat[..., None] > 0.5, msgs, _BIG_NEG)
  agg = jnp.max(masked, axis=1)
  h1 = jnp.einsum("bnh,ho->bno", bf(z), bf(params["wo1"]),
                  preferred_element_type=jnp.float32) + params["bo1"]
  h2 = jnp.einsum("bnm,mo->bno", bf(agg), bf(params["wo2"]),
                  preferred_element_type=jnp.float32) + params["bo2"]
  return jax.nn.relu(h1 + h2)


def make_params(key, hidden_dim, mid_dim, out_dim):
  """Deterministic nn.Linear-style init (uniform +/- 1/sqrt(fan_in))."""
  def linear(k, fan_in, fan_out):
    kw, kb = jax.random.split(k)
    lim = 1.0 / jnp.sqrt(fan_in)
    w = jax.random.uniform(kw, (fan_in, fan_out), jnp.float32, -lim, lim)
    b = jax.random.uniform(kb, (fan_out,), jnp.float32, -lim, lim)
    return w, b

  ks = jax.random.split(key, 6)
  w1, b1 = linear(ks[0], 2 * hidden_dim, mid_dim)
  w2, b2 = linear(ks[1], 2 * hidden_dim, mid_dim)
  we, be = linear(ks[2], hidden_dim, mid_dim)
  wg, bg = linear(ks[3], hidden_dim, mid_dim)
  wo1, bo1 = linear(ks[4], 2 * hidden_dim, out_dim)
  wo2, bo2 = linear(ks[5], mid_dim, out_dim)
  return dict(w1=w1, b1=b1, w2=w2, b2=b2, we=we, be=be, wg=wg, bg=bg,
              wo1=wo1, bo1=bo1, wo2=wo2, bo2=bo2)


if __name__ == "__main__":
  # Lane-dense feature dims (multiples of 128), N a multiple of 8; tile_i=8
  # exercises the tiled sender-axis reduction (2 tiles of 8 senders each).
  B, N, H = 2, 16, 128
  MID, OUT = 128, 128

  key = jax.random.PRNGKey(0)
  k_node, k_edge, k_graph, k_adj, k_hidden, k_param = jax.random.split(key, 6)

  node_fts = jax.random.normal(k_node, (B, N, H), jnp.float32)
  edge_fts = jax.random.normal(k_edge, (B, N, N, H), jnp.float32)
  graph_fts = jax.random.normal(k_graph, (B, H), jnp.float32)
  hidden = jax.random.normal(k_hidden, (B, N, H), jnp.float32)
  adj_mat = (jax.random.uniform(k_adj, (B, N, N)) > 0.5).astype(jnp.float32)
  adj_mat = jnp.maximum(adj_mat, jnp.eye(N, dtype=jnp.float32)[None])  # self-loops

  params = make_params(k_param, H, MID, OUT)

  node_emb, edge_emb = mpnn_processor(
      node_fts, edge_fts, graph_fts, adj_mat, hidden, params, tile_i=8)
  node_emb = jax.block_until_ready(node_emb)

  ref = mpnn_reference(node_fts, edge_fts, graph_fts, adj_mat, hidden, params)
  assert node_emb.shape == (B, N, OUT)
  assert edge_emb is None
  max_err = float(jnp.max(jnp.abs(node_emb - ref)))
  assert jnp.allclose(node_emb, ref, atol=1e-2, rtol=1e-2), (
      f"mismatch vs. reference, max abs err = {max_err}")

  print("KERNEL_OK")
</pallas_src>

<mosaic_0001>
module attributes {stable_mosaic.version = 11 : i64} {
  func.func @_mpnn_kernel(%arg0: i32, %arg1: i32, %arg2: memref<1x16x256xbf16, #tpu.memory_space<vmem>>, %arg3: memref<1x8x16x128xbf16, #tpu.memory_space<vmem>>, %arg4: memref<1x1x128xbf16, #tpu.memory_space<vmem>>, %arg5: memref<1x8x16xf32, #tpu.memory_space<vmem>>, %arg6: memref<256x256xbf16, #tpu.memory_space<vmem>>, %arg7: memref<1x256xf32, #tpu.memory_space<vmem>>, %arg8: memref<128x128xbf16, #tpu.memory_space<vmem>>, %arg9: memref<1x128xf32, #tpu.memory_space<vmem>>, %arg10: memref<128x128xbf16, #tpu.memory_space<vmem>>, %arg11: memref<256x128xbf16, #tpu.memory_space<vmem>>, %arg12: memref<128x128xbf16, #tpu.memory_space<vmem>>, %arg13: memref<1x128xf32, #tpu.memory_space<vmem>>, %arg14: memref<1x16x128xf32, #tpu.memory_space<vmem>>, %arg15: memref<16x128xf32, #tpu.memory_space<vmem>>, %arg16: memref<16x128xf32, #tpu.memory_space<vmem>>, %arg17: memref<16x128xf32, #tpu.memory_space<vmem>>) attributes {dimension_semantics = [#tpu.dimension_semantics<parallel>, #tpu.dimension_semantics<arbitrary>], iteration_bounds = array<i64: 2, 2>, scalar_prefetch = 0 : i64, scratch_operands = 3 : i64, tpu.core_type = #tpu.core_type<tc>, window_params = [{transform_indices = @transform_0, window_bounds = array<i64: 1, 16, 256>}, {transform_indices = @transform_1, window_bounds = array<i64: 1, 8, 16, 128>}, {transform_indices = @transform_2, window_bounds = array<i64: 1, 1, 128>}, {transform_indices = @transform_3, window_bounds = array<i64: 1, 8, 16>}, {pipeline_mode = #tpu.pipeline_mode<synchronous>, transform_indices = @transform_4, window_bounds = array<i64: 256, 256>}, {pipeline_mode = #tpu.pipeline_mode<synchronous>, transform_indices = @transform_5, window_bounds = array<i64: 1, 256>}, {pipeline_mode = #tpu.pipeline_mode<synchronous>, transform_indices = @transform_6, window_bounds = array<i64: 128, 128>}, {pipeline_mode = #tpu.pipeline_mode<synchronous>, transform_indices = @transform_7, window_bounds = array<i64: 1, 128>}, {pipeline_mode = #tpu.pipeline_mode<synchronous>, transform_indices = @transform_8, window_bounds = array<i64: 128, 128>}, {pipeline_mode = #tpu.pipeline_mode<synchronous>, transform_indices = @transform_9, window_bounds = array<i64: 256, 128>}, {pipeline_mode = #tpu.pipeline_mode<synchronous>, transform_indices = @transform_10, window_bounds = array<i64: 128, 128>}, {pipeline_mode = #tpu.pipeline_mode<synchronous>, transform_indices = @transform_11, window_bounds = array<i64: 1, 128>}, {transform_indices = @transform_12, window_bounds = array<i64: 1, 16, 128>}]} {
    %c0_i32 = arith.constant 0 : i32
    %0 = arith.cmpi eq, %arg1, %c0_i32 : i32
    %1 = arith.extui %0 : i1 to i32
    %c0_i32_0 = arith.constant 0 : i32
    %2 = arith.cmpi ne, %1, %c0_i32_0 : i32
    scf.if %2 {
      %c0_20 = arith.constant 0 : index
      %c0_21 = arith.constant 0 : index
      %c0_22 = arith.constant 0 : index
      %36 = vector.load %arg2[%c0_20, %c0_21, %c0_22] : memref<1x16x256xbf16, #tpu.memory_space<vmem>>, vector<1x16x256xbf16>
      %37 = vector.shape_cast %36 : vector<1x16x256xbf16> to vector<16x256xbf16>
      %c0_23 = arith.constant 0 : index
      %c0_24 = arith.constant 0 : index
      %38 = vector.load %arg6[%c0_23, %c0_24] : memref<256x256xbf16, #tpu.memory_space<vmem>>, vector<256x256xbf16>
      %cst_25 = arith.constant dense<0.000000e+00> : vector<16x256xf32>
      %39 = tpu.matmul %37, %38, %cst_25 {dimension_numbers = #tpu.dot_dimension_numbers<[1], [0], [0], [1], [0, 0, 1, 1], [], []>} : vector<16x256xbf16>, vector<256x256xbf16>, vector<16x256xf32> -> vector<16x256xf32>
      %c0_26 = arith.constant 0 : index
      %c0_27 = arith.constant 0 : index
      %40 = vector.load %arg7[%c0_26, %c0_27] : memref<1x256xf32, #tpu.memory_space<vmem>>, vector<1x256xf32>
      %41 = vector.broadcast %40 : vector<1x256xf32> to vector<16x256xf32>
      %42 = arith.addf %39, %41 : vector<16x256xf32>
      %c0_28 = arith.constant 0 : index
      %c0_29 = arith.constant 0 : index
      %c0_30 = arith.constant 0 : index
      %43 = vector.load %arg4[%c0_28, %c0_29, %c0_30] : memref<1x1x128xbf16, #tpu.memory_space<vmem>>, vector<1x1x128xbf16>
      %44 = vector.shape_cast %43 : vector<1x1x128xbf16> to vector<1x128xbf16>
      %c0_31 = arith.constant 0 : index
      %c0_32 = arith.constant 0 : index
      %45 = vector.load %arg8[%c0_31, %c0_32] : memref<128x128xbf16, #tpu.memory_space<vmem>>, vector<128x128xbf16>
      %cst_33 = arith.constant dense<0.000000e+00> : vector<1x128xf32>
      %46 = tpu.matmul %44, %45, %cst_33 {dimension_numbers = #tpu.dot_dimension_numbers<[1], [0], [0], [1], [0, 0, 1, 1], [], []>} : vector<1x128xbf16>, vector<128x128xbf16>, vector<1x128xf32> -> vector<1x128xf32>
      %c0_34 = arith.constant 0 : index
      %c0_35 = arith.constant 0 : index
      %47 = vector.load %arg9[%c0_34, %c0_35] : memref<1x128xf32, #tpu.memory_space<vmem>>, vector<1x128xf32>
      %48 = arith.addf %46, %47 : vector<1x128xf32>
      %49 = vector.extract_strided_slice %42 {offsets = [0, 0], sizes = [16, 128], strides = [1, 1]} : vector<16x256xf32> to vector<16x128xf32>
      %50 = vector.broadcast %48 : vector<1x128xf32> to vector<16x128xf32>
      %51 = arith.addf %49, %50 : vector<16x128xf32>
      %c0_36 = arith.constant 0 : index
      %c0_37 = arith.constant 0 : index
      %52 = vector.load %arg15[%c0_36, %c0_37] : memref<16x128xf32, #tpu.memory_space<vmem>>, vector<16x128xf32>
      tpu.vector_store %arg15[%c0_36, %c0_37], %51 {strides = array<i32>} : memref<16x128xf32, #tpu.memory_space<vmem>>, vector<16x128xf32>,
      %53 = vector.extract_strided_slice %42 {offsets = [0, 128], sizes = [16, 128], strides = [1, 1]} : vector<16x256xf32> to vector<16x128xf32>
      %c0_38 = arith.constant 0 : index
      %c0_39 = arith.constant 0 : index
      %54 = vector.load %arg16[%c0_38, %c0_39] : memref<16x128xf32, #tpu.memory_space<vmem>>, vector<16x128xf32>
      tpu.vector_store %arg16[%c0_38, %c0_39], %53 {strides = array<i32>} : memref<16x128xf32, #tpu.memory_space<vmem>>, vector<16x128xf32>,
      %cst_40 = arith.constant -1.000000e+09 : f32
      %55 = vector.broadcast %cst_40 : f32 to vector<16x128xf32>
      %c0_41 = arith.constant 0 : index
      %c0_42 = arith.constant 0 : index
      %56 = vector.load %arg17[%c0_41, %c0_42] : memref<16x128xf32, #tpu.memory_space<vmem>>, vector<16x128xf32>
      tpu.vector_store %arg17[%c0_41, %c0_42], %55 {strides = array<i32>} : memref<16x128xf32, #tpu.memory_space<vmem>>, vector<16x128xf32>,
    } else {
    }
    %c0 = arith.constant 0 : index
    %c0_1 = arith.constant 0 : index
    %c0_2 = arith.constant 0 : index
    %c0_3 = arith.constant 0 : index
    %3 = vector.load %arg3[%c0, %c0_1, %c0_2, %c0_3] : memref<1x8x16x128xbf16, #tpu.memory_space<vmem>>, vector<1x8x16x128xbf16>
    %4 = vector.shape_cast %3 : vector<1x8x16x128xbf16> to vector<8x16x128xbf16>
    %5 = vector.shape_cast %4 : vector<8x16x128xbf16> to vector<128x128xbf16>
    %c0_4 = arith.constant 0 : index
    %c0_5 = arith.constant 0 : index
    %6 = vector.load %arg10[%c0_4, %c0_5] : memref<128x128xbf16, #tpu.memory_space<vmem>>, vector<128x128xbf16>
    %cst = arith.constant dense<0.000000e+00> : vector<128x128xf32>
    %7 = tpu.matmul %5, %6, %cst {dimension_numbers = #tpu.dot_dimension_numbers<[1], [0], [0], [1], [0, 0, 1, 1], [], []>} : vector<128x128xbf16>, vector<128x128xbf16>, vector<128x128xf32> -> vector<128x128xf32>
    %8 = vector.shape_cast %7 : vector<128x128xf32> to vector<8x16x128xf32>
    %c8_i32 = arith.constant 8 : i32
    %9 = arith.muli %arg1, %c8_i32 : i32
    %10 = tpu.assume_multiple %9, 8 : i32
    %11 = arith.index_cast %10 : i32 to index
    %c0_6 = arith.constant 0 : index
    %12 = vector.load %arg16[%11, %c0_6] : memref<16x128xf32, #tpu.memory_space<vmem>>, vector<8x128xf32>
    %c0_7 = arith.constant 0 : index
    %c0_8 = arith.constant 0 : index
    %13 = vector.load %arg15[%c0_7, %c0_8] : memref<16x128xf32, #tpu.memory_space<vmem>>, vector<16x128xf32>
    %14 = vector.shape_cast %13 : vector<16x128xf32> to vector<1x16x128xf32>
    %15 = vector.shape_cast %12 : vector<8x128xf32> to vector<8x1x128xf32>
    %16 = vector.broadcast %14 : vector<1x16x128xf32> to vector<8x16x128xf32>
    %17 = vector.broadcast %15 : vector<8x1x128xf32> to vector<8x16x128xf32>
    %18 = arith.addf %16, %17 : vector<8x16x128xf32>
    %19 = arith.addf %18, %8 : vector<8x16x128xf32>
    %c0_9 = arith.constant 0 : index
    %c0_10 = arith.constant 0 : index
    %c0_11 = arith.constant 0 : index
    %20 = vector.load %arg5[%c0_9, %c0_10, %c0_11] : memref<1x8x16xf32, #tpu.memory_space<vmem>>, vector<1x8x16xf32>
    %21 = vector.shape_cast %20 : vector<1x8x16xf32> to vector<8x16xf32>
    %22 = vector.shape_cast %21 : vector<8x16xf32> to vector<8x16x1xf32>
    %cst_12 = arith.constant 5.000000e-01 : f32
    %23 = vector.broadcast %cst_12 : f32 to vector<8x16x1xf32>
    %24 = arith.cmpf ogt, %22, %23 : vector<8x16x1xf32>
    %cst_13 = arith.constant -1.000000e+09 : f32
    %25 = vector.shape_cast %24 : vector<8x16x1xi1> to vector<8x16x1xi1>
    %26 = vector.broadcast %25 : vector<8x16x1xi1> to vector<8x16x128xi1>
    %27 = vector.broadcast %cst_13 : f32 to vector<8x16x128xf32>
    %28 = arith.select %26, %19, %27 : vector<8x16x128xi1>, vector<8x16x128xf32>
    %cst_14 = arith.constant dense<0xFF800000> : vector<16x128xf32>
    %29 = vector.multi_reduction <maximumf>, %28, %cst_14 [0] : vector<8x16x128xf32> to vector<16x128xf32>
    %c0_15 = arith.constant 0 : index
    %c0_16 = arith.constant 0 : index
    %30 = vector.load %arg17[%c0_15, %c0_16] : memref<16x128xf32, #tpu.memory_space<vmem>>, vector<16x128xf32>
    %31 = arith.maximumf %30, %29 : vector<16x128xf32>
    %c0_17 = arith.constant 0 : index
    %c0_18 = arith.constant 0 : index
    %32 = vector.load %arg17[%c0_17, %c0_18] : memref<16x128xf32, #tpu.memory_space<vmem>>, vector<16x128xf32>
    tpu.vector_store %arg17[%c0_17, %c0_18], %31 {strides = array<i32>} : memref<16x128xf32, #tpu.memory_space<vmem>>, vector<16x128xf32>,
    %c1_i32 = arith.constant 1 : i32
    %33 = arith.cmpi eq, %arg1, %c1_i32 : i32
    %34 = arith.extui %33 : i1 to i32
    %c0_i32_19 = arith.constant 0 : i32
    %35 = arith.cmpi ne, %34, %c0_i32_19 : i32
    scf.if %35 {
      %c0_20 = arith.constant 0 : index
      %c0_21 = arith.constant 0 : index
      %c0_22 = arith.constant 0 : index
      %36 = vector.load %arg2[%c0_20, %c0_21, %c0_22] : memref<1x16x256xbf16, #tpu.memory_space<vmem>>, vector<1x16x256xbf16>
      %37 = vector.shape_cast %36 : vector<1x16x256xbf16> to vector<16x256xbf16>
      %c0_23 = arith.constant 0 : index
      %c0_24 = arith.constant 0 : index
      %38 = vector.load %arg11[%c0_23, %c0_24] : memref<256x128xbf16, #tpu.memory_space<vmem>>, vector<256x128xbf16>
      %cst_25 = arith.constant dense<0.000000e+00> : vector<16x128xf32>
      %39 = tpu.matmul %37, %38, %cst_25 {dimension_numbers = #tpu.dot_dimension_numbers<[1], [0], [0], [1], [0, 0, 1, 1], [], []>} : vector<16x256xbf16>, vector<256x128xbf16>, vector<16x128xf32> -> vector<16x128xf32>
      %c0_26 = arith.constant 0 : index
      %c0_27 = arith.constant 0 : index
      %40 = vector.load %arg17[%c0_26, %c0_27] : memref<16x128xf32, #tpu.memory_space<vmem>>, vector<16x128xf32>
      %41 = arith.truncf %40 : vector<16x128xf32> to vector<16x128xbf16>
      %c0_28 = arith.constant 0 : index
      %c0_29 = arith.constant 0 : index
      %42 = vector.load %arg12[%c0_28, %c0_29] : memref<128x128xbf16, #tpu.memory_space<vmem>>, vector<128x128xbf16>
      %cst_30 = arith.constant dense<0.000000e+00> : vector<16x128xf32>
      %43 = tpu.matmul %41, %42, %cst_30 {dimension_numbers = #tpu.dot_dimension_numbers<[1], [0], [0], [1], [0, 0, 1, 1], [], []>} : vector<16x128xbf16>, vector<128x128xbf16>, vector<16x128xf32> -> vector<16x128xf32>
      %44 = arith.addf %39, %43 : vector<16x128xf32>
      %c0_31 = arith.constant 0 : index
      %c0_32 = arith.constant 0 : index
      %45 = vector.load %arg13[%c0_31, %c0_32] : memref<1x128xf32, #tpu.memory_space<vmem>>, vector<1x128xf32>
      %46 = vector.broadcast %45 : vector<1x128xf32> to vector<16x128xf32>
      %47 = arith.addf %44, %46 : vector<16x128xf32>
      %cst_33 = arith.constant 0.000000e+00 : f32
      %48 = vector.broadcast %cst_33 : f32 to vector<16x128xf32>
      %49 = arith.maximumf %47, %48 : vector<16x128xf32>
      %c0_34 = arith.constant 0 : index
      %c0_35 = arith.constant 0 : index
      %c0_36 = arith.constant 0 : index
      %50 = vector.load %arg14[%c0_34, %c0_35, %c0_36] : memref<1x16x128xf32, #tpu.memory_space<vmem>>, vector<1x16x128xf32>
      %51 = vector.shape_cast %50 : vector<1x16x128xf32> to vector<16x128xf32>
      %52 = vector.shape_cast %49 : vector<16x128xf32> to vector<1x16x128xf32>
      tpu.vector_store %arg14[%c0_34, %c0_35, %c0_36], %52 {strides = array<i32>} : memref<1x16x128xf32, #tpu.memory_space<vmem>>, vector<1x16x128xf32>,
    } else {
    }
    return
  }
  func.func @transform_0(%arg0: i32, %arg1: i32) -> (i32, i32, i32) {
    %c0_i32 = arith.constant 0 : i32
    %c0_i32_0 = arith.constant 0 : i32
    %c0_i32_1 = arith.constant 0 : i32
    return %arg0, %c0_i32, %c0_i32_0 : i32, i32, i32
  }
  func.func @transform_1(%arg0: i32, %arg1: i32) -> (i32, i32, i32, i32) {
    %c0_i32 = arith.constant 0 : i32
    %c0_i32_0 = arith.constant 0 : i32
    %c0_i32_1 = arith.constant 0 : i32
    return %arg0, %arg1, %c0_i32, %c0_i32_0 : i32, i32, i32, i32
  }
  func.func @transform_2(%arg0: i32, %arg1: i32) -> (i32, i32, i32) {
    %c0_i32 = arith.constant 0 : i32
    %c0_i32_0 = arith.constant 0 : i32
    %c0_i32_1 = arith.constant 0 : i32
    return %arg0, %c0_i32, %c0_i32_0 : i32, i32, i32
  }
  func.func @transform_3(%arg0: i32, %arg1: i32) -> (i32, i32, i32) {
    %c0_i32 = arith.constant 0 : i32
    %c0_i32_0 = arith.constant 0 : i32
    return %arg0, %arg1, %c0_i32 : i32, i32, i32
  }
  func.func @transform_4(%arg0: i32, %arg1: i32) -> (i32, i32) {
    %c0_i32 = arith.constant 0 : i32
    %c0_i32_0 = arith.constant 0 : i32
    %c0_i32_1 = arith.constant 0 : i32
    return %c0_i32, %c0_i32_0 : i32, i32
  }
  func.func @transform_5(%arg0: i32, %arg1: i32) -> (i32, i32) {
    %c0_i32 = arith.constant 0 : i32
    %c0_i32_0 = arith.constant 0 : i32
    %c0_i32_1 = arith.constant 0 : i32
    return %c0_i32, %c0_i32_0 : i32, i32
  }
  func.func @transform_6(%arg0: i32, %arg1: i32) -> (i32, i32) {
    %c0_i32 = arith.constant 0 : i32
    %c0_i32_0 = arith.constant 0 : i32
    %c0_i32_1 = arith.constant 0 : i32
    return %c0_i32, %c0_i32_0 : i32, i32
  }
  func.func @transform_7(%arg0: i32, %arg1: i32) -> (i32, i32) {
    %c0_i32 = arith.constant 0 : i32
    %c0_i32_0 = arith.constant 0 : i32
    %c0_i32_1 = arith.constant 0 : i32
    return %c0_i32, %c0_i32_0 : i32, i32
  }
  func.func @transform_8(%arg0: i32, %arg1: i32) -> (i32, i32) {
    %c0_i32 = arith.constant 0 : i32
    %c0_i32_0 = arith.constant 0 : i32
    %c0_i32_1 = arith.constant 0 : i32
    return %c0_i32, %c0_i32_0 : i32, i32
  }
  func.func @transform_9(%arg0: i32, %arg1: i32) -> (i32, i32) {
    %c0_i32 = arith.constant 0 : i32
    %c0_i32_0 = arith.constant 0 : i32
    %c0_i32_1 = arith.constant 0 : i32
    return %c0_i32, %c0_i32_0 : i32, i32
  }
  func.func @transform_10(%arg0: i32, %arg1: i32) -> (i32, i32) {
    %c0_i32 = arith.constant 0 : i32
    %c0_i32_0 = arith.constant 0 : i32
    %c0_i32_1 = arith.constant 0 : i32
    return %c0_i32, %c0_i32_0 : i32, i32
  }
  func.func @transform_11(%arg0: i32, %arg1: i32) -> (i32, i32) {
    %c0_i32 = arith.constant 0 : i32
    %c0_i32_0 = arith.constant 0 : i32
    %c0_i32_1 = arith.constant 0 : i32
    return %c0_i32, %c0_i32_0 : i32, i32
  }
  func.func @transform_12(%arg0: i32, %arg1: i32) -> (i32, i32, i32) {
    %c0_i32 = arith.constant 0 : i32
    %c0_i32_0 = arith.constant 0 : i32
    %c0_i32_1 = arith.constant 0 : i32
    return %arg0, %c0_i32, %c0_i32_0 : i32, i32, i32
  }
}

</mosaic_0001>

<bundles_post_ra>
// kernel: tpu_custom_call.1
= control target key start
LH: loop header
LB: loop body
LE: loop exit
PB: predicated region body
PF: predicated region fallthrough
CT: control target
= control target key end

     0   :  { %s3668_s0 = inlined_call_operand.hbm [shape: bf16[2,16,256], index: 0, kind: input, shape index: {}]   ;;  %s3669_s1 = inlined_call_operand.hbm [shape: bf16[2,16,16,128], index: 1, kind: input, shape index: {}]   ;;  %s3670_s2 = inlined_call_operand.vmem [shape: bf16[2,1,128], index: 2, kind: input, shape index: {}]   ;;  %s3671_s3 = inlined_call_operand.hbm [shape: f32[2,16,16], index: 3, kind: input, shape index: {}]   ;;  %s3672_s4 = inlined_call_operand.hbm [shape: bf16[256,256], index: 4, kind: input, shape index: {}]   ;;  %s3673_s5 = inlined_call_operand.vmem [shape: f32[1,256], index: 5, kind: input, shape index: {}]   ;;  %s3674_s6 = inlined_call_operand.hbm [shape: bf16[128,128], index: 6, kind: input, shape index: {}]   ;;  %s3675_s7 = inlined_call_operand.vmem [shape: f32[1,128], index: 7, kind: input, shape index: {}]   ;;  %s3676_s8 = inlined_call_operand.hbm [shape: bf16[128,128], index: 8, kind: input, shape index: {}]   ;;  %s3677_s9 = inlined_call_operand.hbm [shape: bf16[256,128], index: 9, kind: input, shape index: {}]   ;;  %s3678_s10 = inlined_call_operand.hbm [shape: bf16[128,128], index: 10, kind: input, shape index: {}]   ;;  %s3679_s11 = inlined_call_operand.vmem [shape: f32[1,128], index: 11, kind: input, shape index: {}]   ;;  %s3680_s12 = inlined_call_operand.hbm [shape: f32[2,16,128], index: 12, kind: output, shape index: {}]  }
   0x1   :  { %3712 = sst [smem:[#allocation35_spill]] %s3668_s0 }
   0x2   :  { %3713 = sst [smem:[#allocation36_spill]] %s3669_s1 }
   0x3   :  { %3714 = sst [smem:[#allocation37_spill]] %s3670_s2 }
   0x4   :  { %3715 = sst [smem:[#allocation38_spill]] %s3671_s3 }
   0x5   :  { %3716 = sst [smem:[#allocation39_spill]] %s3672_s4 }
   0x6   :  { %3717 = sst [smem:[#allocation40_spill]] %s3673_s5 }
   0x7   :  { %3718 = sst [smem:[#allocation41_spill]] %s3674_s6 }
   0x8   :  { %3719 = sst [smem:[#allocation42_spill]] %s3675_s7 }
   0x9   :  { %3720 = sst [smem:[#allocation43_spill]] %s3676_s8 }
   0xa   :  { %3721 = sst [smem:[#allocation44_spill]] %s3677_s9 }
   0xb   :  { %3722 = sst [smem:[#allocation45_spill]] %s3678_s10 }
   0xc   :  { %3723 = sst [smem:[#allocation46_spill]] %s3679_s11 }
   0xd   :  { %3724 = sst [smem:[#allocation47_spill]] %s3680_s12 }
   0xe   :  { %17 = vsyncpa [#allocation6], 0 }
   0xf   :  { %19 = vsyncpa [#allocation6 + $0x1], 0 }
  0x10   :  { %20 = vsyncpa [#allocation9], 0 }
  0x11   :  { %22 = vsyncpa [#allocation9 + $0x1], 0 }
  0x12   :  { %23 = vsyncpa [#allocation12], 0 }
  0x13   :  { %24 = vsyncpa [#allocation15], 0 }
  0x14   :  { %25 = vsyncpa [#allocation18], 0 }
  0x15   :  { %26 = vsyncpa [#allocation7], 0 }
  0x16   :  { %28 = vsyncpa [#allocation7 + $0x1], 0  ;;  %s3037_s21 = smov 0   ;;  %s3039_s22 = smov 0  }
  0x17   :  { %s3041_s23 = smov 0   ;;  %s3043_s24 = smov 0  }
  0x18   :  { %s3045_s25 = smov 0   ;;  %s3047_s26 = smov 0  }
  0x19   :  { %s3049_s27 = smov 0   ;;  %s3051_s28 = smov 0  }
  0x1a   :  { %s3053_s29 = smov 0   ;;  %s3055_s30 = smov 0  }
  0x1b   :  { %s3057_s13 = smov 0  }
  0x1c LB: > { %3725 = sst [smem:[#allocation26_spill]] %s2913_s22  ;;  %s3093_s14 = sadd.s32 4294967295, %s2949_s13   ;;  %s2949_s13 = sphi %s3057_s13, %s34_s13   ;;  %s2945_s30 = sphi %s3055_s30, %s3804_s30   ;;  %s2941_s29 = sphi %s3053_s29, %s3803_s29   ;;  %s2937_s28 = sphi %s3051_s28, %s3802_s28   ;;  %s2933_s27 = sphi %s3049_s27, %s3801_s27   ;;  %s2929_s26 = sphi %s3047_s26, %s3800_s26   ;;  %s2925_s25 = sphi %s3045_s25, %s3799_s25   ;;  %s2921_s24 = sphi %s3043_s24, %s3798_s24   ;;  %s2917_s23 = sphi %s3041_s23, %s3797_s23   ;;  %s2913_s22 = sphi %s3039_s22, %s3796_s22   ;;  %s2909_s21 = sphi %s3037_s21, %s3791_s21  }
  0x1d   : > { %3726 = sst [smem:[#allocation27_spill]] %s2933_s27  ;;  %p2035_p0 = scmp.ge.s32.totalorder %s2949_s13, 1 }
  0x1e   : > { %3727 = sst [smem:[#allocation28_spill]] %s2937_s28  ;;  %p3684_p1 = scmp.eq.s32.totalorder %s3093_s14, 0 }
  0x1f   : > { %p353_p2 = scmp.lt.s32.totalorder %s2949_s13, 5  ;;  %s2951_s16 = smov [#allocation11]  }
  0x20   : > { %s365_s17 = sshll.u32 %s2951_s16, 4  ;;  %s2952_s19 = smov [#allocation14]   ;;  %s366_s17 = int_to_ptr.vmem [resolvable:$true] %s365_s17 }
  0x21   : > { %p3098_p3 = pnand %p2035_p0, %p353_p2  ;;  %s397_s20 = sshll.u32 %s2952_s19, 4  ;;  %s398_s20 = int_to_ptr.vmem [resolvable:$true] %s397_s20 }
  0x22   : > { %s3731_s4 = sld [smem:[#allocation39_spill]] }
  0x23   : > { %s3728_s15 = scalar_select %p3098_p3, 1, 0 }
  0x24   : > { %p2331_p4 = pneg %p3098_p3 }
  0x25   : > { %3729 = sst [smem:[#allocation29_spill]] %s3728_s15 }
  0x26   : > { %p3106_p5 = pnand %p2331_p4, %p3684_p1 }
  0x28   : > { %s3730_s18 = scalar_select %p3106_p5, 1, 0 }
  0x29   : > { %s2581_s5 = scalar_lea.hbm %s3731_s4, 4096  ;;  %p3118_p7 = pneg %p3106_p5 }
  0x2a   : > { %p2582_p6 = scmp.ne.s32.totalorder %s3731_s4, %s2581_s5  ;;  %p2588_p10 = scmp.lt.u32.totalorder %s2581_s5, %s3731_s4 }
  0x2c   : > { %p2584_p8 = pnand %p3118_p7, %p2582_p6 }
  0x2e   : > { %p2585_p9 = pneg %p2584_p8 }
  0x30   : > { %p2590_p11 = pnand %p2588_p10, %p2585_p9 }
  0x32   : > { %2593 = shalt.err (!%p2590_p11)
}
  0x33   : > { %s2594_s11 = scalar_lea.vmem %s366_s17, 4096  ;;  %p2602_p2 = scmp.lt.s32.totalorder %s366_s17, %s366_s17 }
  0x34   : > { %p2595_p12 = scmp.ne.s32.totalorder %s366_s17, %s2594_s11  ;;  %p2603_p4 = scmp.lt.s32.totalorder %s2594_s11, %s2594_s11 }
  0x36   : > { %p2597_p13 = pnand %p2595_p12, %p3118_p7  ;;  %p2604_p1 = por %p2603_p4, %p2602_p2 }
  0x38   : > { %p2598_p0 = pneg %p2597_p13 }
  0x3a   : > { %p2605_p3 = pnand %p2604_p1, %p2598_p0 }
  0x3c   : > { %2608 = shalt.err (!%p2605_p3)
}
  0x3d   : > { %s3689_s7 = smov 128   ;;  %s3690_s12 = smov 8  }
  0x3e   : > { %2334 = dma.hbm_to_vmem [thread:$0]  (!%p3106_p5), %s3731_s4, 4096, %s366_s17, [#allocation12], %s3689_s7, %s3689_s7, %s3690_s12  }
  0x3f   : > { %s3733_s8 = sld [smem:[#allocation43_spill]] }
  0x45   : > { %s2609_s19 = scalar_lea.hbm %s3733_s8, 1024 }
  0x46   : > { %p2610_p1 = scmp.ne.s32.totalorder %s3733_s8, %s2609_s19  ;;  %p2616_p8 = scmp.lt.u32.totalorder %s2609_s19, %s3733_s8 }
  0x48   : > { %p2612_p3 = pnand %p2610_p1, %p3118_p7 }
  0x4a   : > { %p2613_p6 = pneg %p2612_p3 }
  0x4c   : > { %p2618_p9 = pnand %p2616_p8, %p2613_p6 }
  0x4e   : > { %2621 = shalt.err (!%p2618_p9)
}
  0x4f   : > { %s2622_s2 = scalar_lea.vmem %s398_s20, 1024  ;;  %p2630_p13 = scmp.lt.s32.totalorder %s398_s20, %s398_s20 }
  0x50   : > { %p2623_p10 = scmp.ne.s32.totalorder %s398_s20, %s2622_s2  ;;  %p2631_p0 = scmp.lt.s32.totalorder %s2622_s2, %s2622_s2 }
  0x52   : > { %p2625_p11 = pnand %p2623_p10, %p3118_p7  ;;  %p2632_p2 = por %p2631_p0, %p2630_p13 }
  0x54   : > { %p2626_p12 = pneg %p2625_p11 }
  0x56   : > { %p2633_p4 = pnand %p2632_p2, %p2626_p12 }
  0x58   : > { %2636 = shalt.err (!%p2633_p4)
}
  0x59   : > { %s3691_s15 = smov 64   ;;  %s3693_s0 = smov 4  }
  0x5a   : > { %2340 = dma.hbm_to_vmem [thread:$0]  (!%p3106_p5), %s3733_s8, 1024, %s398_s20, [#allocation15], %s3691_s15, %s3691_s15, %s3693_s0  }
  0x5b   : > { %s43_s5 = sadd.s32 1, %s2941_s29  ;;  %s46_s27 = sadd.s32 1, %s2945_s30 }
  0x5c   : > { %p44_p1 = scmp.ge.s32.totalorder %s43_s5, 2  ;;  %p3700_p3 = scmp.eq.s32.totalorder %s2949_s13, 0 }
  0x5d   : > { %s81_s28 = sadd.s32 1, %s2917_s23  ;;  %p88_p6 = scmp.ne.s32.totalorder %s2917_s23, %s2913_s22 }
  0x5e   : > { %s3806_s5 = smov (%p44_p1, %s43_s5), 0  ;;  %s3808_s27 = smov (!%p44_p1, %s46_s27), %s2945_s30 }
  0x5f   : > { %3734 = sst [smem:[#allocation30_spill]] %s3806_s5  ;;  %s77_s19 = ssub.s32 %s2941_s29, %s3806_s5 }
  0x60   : > { %p3171_p8 = por %p88_p6, %p3700_p3  ;;  %p48_p9 = scmp.ge.s32.totalorder %s3808_s27, 2 }
  0x61   : > { %p94_p10 = scmp.ne.s32.totalorder %s2913_s22, %s2909_s21  ;;  %p3699_p11 = scmp.lt.s32.totalorder %s2949_s13, 4 }
  0x62   : > { %s461_s11 = sand.u32 1, %s2949_s13   ;;  %s3810_s27 = smov (%p48_p9, %s3808_s27), 0 }
  0x63   : > { %3736 = sst [smem:[#allocation31_spill]] %s3810_s27  ;;  %p3737_p12 = scmp.eq.s32.totalorder %s3093_s14, 0 }
  0x64   : > { %s3189_s3 = ssub.s32 %s2945_s30, %s3810_s27  ;;  %s3704_s17 = sand.u32 1, %s2917_s23  }
  0x65   : > { %p3183_p13 = por %p94_p10, %p3737_p12  ;;  %s78_s7 = sor.u32 %s77_s19, %s3189_s3 }
  0x66   : > { %p79_p2 = scmp.eq.s32.totalorder %s78_s7, 0  ;;  %s2045_s21 = sshll.u32 %s3704_s17, 6 }
  0x67   : > { %s3738_s2 = scalar_select %p3183_p13, 1, 0 }
  0x68   : > { %s2157_s12 = sshll.u32 %s2941_s29, 4  ;;  %s2048_s0 = sshll.u32 %s2945_s30, 5 }
  0x69   : > { %3739 = sst [smem:[#allocation32_spill]] %s3738_s2  ;;  %s465_s4 = scalar_lea.vmem [#allocation8], %s2045_s21 }
  0x6a   : > { %s3198_s15 = scalar_select %p79_p2, %s2917_s23, %s81_s28  }
  0x6b   : > { %s475_s8 = sshll.u32 %s465_s4, 4  ;;  %s472_s5 = sadd.s32 %s2157_s12, %s2048_s0  ;;  %s3201_s8 = int_to_ptr.vmem [resolvable:$true] %s475_s8 }
  0x6c   : > { %3740 = sst [smem:[#allocation33_spill]] %s3198_s15  ;;  %s2049_s2 = sshll.u32 %s472_s5, 6 }
  0x6d   : > { %p3207_p4 = pnand %p3699_p11, %p3171_p8  ;;  %s3742_s1 = sld [smem:[#allocation36_spill]] }
  0x6e   : > { %s2957_s4 = smov [#allocation13]   ;;  %s3218_s0 = scalar_lea.sflag [#allocation9], %s461_s11 }
  0x6f   : > { %s3741_s27 = scalar_select %p3207_p4, 1, 0 }
  0x70   : > { %s3216_s12 = sshll.u32 %s2957_s4, 4  ;;  %p3705_p6 = pneg %p3207_p4  ;;  %s382_s12 = int_to_ptr.vmem [resolvable:$true] %s3216_s12 }
  0x73   : > { %s3214_s28 = scalar_lea.hbm %s3742_s1, %s2049_s2  ;;  %s2642_s21 = scalar_lea.hbm %s3742_s1, 4096 }
  0x74   : > { %s2637_s5 = scalar_lea.hbm %s3214_s28, 1024  ;;  %p2643_p10 = scmp.lt.u32.totalorder %s3214_s28, %s3742_s1 }
  0x75   : > { %p2638_p1 = scmp.ne.s32.totalorder %s3214_s28, %s2637_s5  ;;  %p2644_p12 = scmp.lt.u32.totalorder %s2642_s21, %s2637_s5 }
  0x76   : > { %p2646_p11 = scmp.lt.u32.totalorder %s2637_s5, %s3214_s28 }
  0x77   : > { %p2640_p8 = pnand %p3705_p6, %p2638_p1  ;;  %p2645_p2 = por %p2644_p12, %p2643_p10 }
  0x79   : > { %p2641_p9 = pneg %p2640_p8  ;;  %p2647_p3 = por %p2646_p11, %p2645_p2 }
  0x7b   : > { %p2648_p0 = pnand %p2647_p3, %p2641_p9 }
  0x7d   : > { %2651 = shalt.err (!%p2648_p0)
}
  0x7e   : > { %s2652_s11 = scalar_lea.vmem %s3201_s8, 1024  ;;  %s2958_s4 = smov [#allocation8]  }
  0x7f   : > { %p2653_p1 = scmp.ne.s32.totalorder %s3201_s8, %s2652_s11  ;;  %s2657_s20 = sshll.u32 %s2958_s4, 4  ;;  %s2658_s20 = int_to_ptr.vmem [resolvable:$false] %s2657_s20 }
  0x80   : > { %s2659_s2 = scalar_lea.vmem %s2658_s20, 2048  ;;  %p2660_p5 = scmp.lt.s32.totalorder %s3201_s8, %s2658_s20 }
  0x81   : > { %p2655_p8 = pnand %p2653_p1, %p3705_p6  ;;  %p2661_p10 = scmp.lt.s32.totalorder %s2659_s2, %s2652_s11 }
  0x83   : > { %p2656_p13 = pneg %p2655_p8  ;;  %p2662_p12 = por %p2661_p10, %p2660_p5 }
  0x85   : > { %p2663_p11 = pnand %p2662_p12, %p2656_p13 }
  0x87   : > { %2666 = shalt.err (!%p2663_p11)
}
  0x88   : > { %s3743_s5 = smov 4   ;;  %s3744_s21 = smov 64  }
  0x89   : > { %2353 = dma.hbm_to_vmem [thread:$0]  (!%p3207_p4), %s3214_s28, 1024, %s3201_s8, %s3218_s0, %s3744_s21, %s3744_s21, %s3743_s5  }
  0x8a   : > { %s3745_s6 = sld [smem:[#allocation41_spill]] }
  0x90   : > { %s2667_s4 = scalar_lea.hbm %s3745_s6, 1024 }
  0x91   : > { %p2668_p5 = scmp.ne.s32.totalorder %s3745_s6, %s2667_s4  ;;  %p2674_p0 = scmp.lt.u32.totalorder %s2667_s4, %s3745_s6 }
  0x93   : > { %p2670_p3 = pnand %p2668_p5, %p3118_p7 }
  0x95   : > { %p2671_p13 = pneg %p2670_p3 }
  0x97   : > { %p2676_p9 = pnand %p2674_p0, %p2671_p13 }
  0x99   : > { %2679 = shalt.err (!%p2676_p9)
}
  0x9a   : > { %s2680_s1 = scalar_lea.vmem %s382_s12, 1024  ;;  %p2688_p10 = scmp.lt.s32.totalorder %s382_s12, %s382_s12 }
  0x9b   : > { %p2681_p2 = scmp.ne.s32.totalorder %s382_s12, %s2680_s1  ;;  %p2689_p12 = scmp.lt.s32.totalorder %s2680_s1, %s2680_s1 }
  0x9d   : > { %p2683_p1 = pnand %p2681_p2, %p3118_p7  ;;  %p2690_p11 = por %p2689_p12, %p2688_p10 }
  0x9f   : > { %p2684_p8 = pneg %p2683_p1 }
  0xa1   : > { %p2691_p6 = pnand %p2690_p11, %p2684_p8 }
  0xa3   : > { %2694 = shalt.err (!%p2691_p6)
}
  0xa4   : > { %p3746_p5 = scmp.ne.s32.totalorder %s3730_s18, 0  ;;  %s2959_s28 = smov [#allocation16]  }
  0xa5   : > { %s410_s19 = sshll.u32 %s2959_s28, 4  ;;  %s2960_s7 = smov [#allocation17]   ;;  %s411_s19 = int_to_ptr.vmem [resolvable:$true] %s410_s19 }
  0xa6   : > { %2337 = dma.hbm_to_vmem [thread:$0]  (!%p3746_p5), %s3745_s6, 1024, %s382_s12, [#allocation12], %s3744_s21, %s3744_s21, %s3743_s5  }
  0xa7   : > { %s423_s4 = sshll.u32 %s2960_s7, 4  ;;  %s3747_s9 = sld [smem:[#allocation44_spill]]  ;;  %s424_s4 = int_to_ptr.vmem [resolvable:$true] %s423_s4 }
  0xad   : > { %s2695_s20 = scalar_lea.hbm %s3747_s9, 2048 }
  0xae   : > { %p2696_p6 = scmp.ne.s32.totalorder %s3747_s9, %s2695_s20  ;;  %p2702_p0 = scmp.lt.u32.totalorder %s2695_s20, %s3747_s9 }
  0xb0   : > { %p2698_p3 = pnand %p2696_p6, %p3118_p7 }
  0xb2   : > { %p2699_p13 = pneg %p2698_p3 }
  0xb4   : > { %p2704_p9 = pnand %p2702_p0, %p2699_p13 }
  0xb6   : > { %2707 = shalt.err (!%p2704_p9)
}
  0xb7   : > { %s2708_s12 = scalar_lea.vmem %s411_s19, 2048  ;;  %p2716_p10 = scmp.lt.s32.totalorder %s411_s19, %s411_s19 }
  0xb8   : > { %p2709_p2 = scmp.ne.s32.totalorder %s411_s19, %s2708_s12  ;;  %p2717_p12 = scmp.lt.s32.totalorder %s2708_s12, %s2708_s12 }
  0xba   : > { %p2711_p1 = pnand %p2709_p2, %p3118_p7  ;;  %p2718_p11 = por %p2717_p12, %p2716_p10 }
  0xbc   : > { %p2712_p8 = pneg %p2711_p1 }
  0xbe   : > { %p2719_p4 = pnand %p2718_p11, %p2712_p8 }
  0xc0   : > { %2722 = shalt.err (!%p2719_p4)
}
  0xc1   : > { %2343 = dma.hbm_to_vmem [thread:$0]  (!%p3746_p5), %s3747_s9, 2048, %s411_s19, [#allocation15], %s3744_s21, %s3744_s21, %s3743_s5  }
  0xc2   : > { %s3748_s10 = sld [smem:[#allocation45_spill]] }
  0xc8   : > { %s2723_s7 = scalar_lea.hbm %s3748_s10, 1024 }
  0xc9   : > { %p2724_p6 = scmp.ne.s32.totalorder %s3748_s10, %s2723_s7  ;;  %p2730_p13 = scmp.lt.u32.totalorder %s2723_s7, %s3748_s10 }
  0xcb   : > { %p2726_p4 = pnand %p2724_p6, %p3118_p7 }
  0xcd   : > { %p2727_p3 = pneg %p2726_p4 }
  0xcf   : > { %p2732_p0 = pnand %p2730_p13, %p2727_p3 }
  0xd1   : > { %2735 = shalt.err (!%p2732_p0)
}
  0xd2   : > { %s2736_s8 = scalar_lea.vmem %s424_s4, 1024  ;;  %p2744_p8 = scmp.lt.s32.totalorder %s424_s4, %s424_s4 }
  0xd3   : > { %p2737_p9 = scmp.ne.s32.totalorder %s424_s4, %s2736_s8  ;;  %p2745_p10 = scmp.lt.s32.totalorder %s2736_s8, %s2736_s8 }
  0xd5   : > { %p2739_p2 = pnand %p2737_p9, %p3118_p7  ;;  %p2746_p12 = por %p2745_p10, %p2744_p8 }
  0xd7   : > { %p2740_p1 = pneg %p2739_p2 }
  0xd9   : > { %p2747_p11 = pnand %p2746_p12, %p2740_p1 }
  0xdb   : > { %2750 = shalt.err (!%p2747_p11)
}
  0xdc   : > { %2346 = dma.hbm_to_vmem [thread:$0]  (!%p3746_p5), %s3748_s10, 1024, %s424_s4, [#allocation18], %s3744_s21, %s3744_s21, %s3743_s5  }
  0xdd   : > { %s2034_s18 = sadd.s32 4294967294, %s2949_s13   ;;  %s53_s16 = sadd.s32 1, %s2929_s26 }
  0xde   : > { %p60_p7 = scmp.ne.s32.totalorder %s2929_s26, %s2925_s25  ;;  %p3749_p6 = scmp.eq.s32.totalorder %s3189_s3, 0 }
  0xdf   : > { %p3751_p4 = scmp.eq.s32.totalorder %s2949_s13, 0  ;;  %p66_p13 = scmp.ne.s32.totalorder %s2925_s25, %s2921_s24 }
  0xe0   : > { %s3320_s22 = scalar_select %p3749_p6, %s2929_s26, %s53_s16  }
  0xe1   : > { %p3324_p3 = por %p3751_p4, %p60_p7  ;;  %p340_p0 = scmp.eq.s32.totalorder %s3093_s14, 3 }
  0xe2   : > { %3750 = sst [smem:[#allocation34_spill]] %s3320_s22  ;;  %p346_p9 = scmp.eq.s32.totalorder %s2034_s18, 3 }
  0xe3   : > { %p3753_p2 = scmp.eq.s32.totalorder %s3093_s14, 0  ;;  %s440_s3 = sand.u32 1, %s2929_s26  }
  0xe4   : > { %p3338_p1 = por %p340_p0, %p60_p7  ;;  %p3342_p8 = por %p346_p9, %p66_p13 }
  0xe5   : > { %p3333_p5 = por %p3753_p2, %p66_p13  ;;  %s2042_s17 = sshll.u32 %s440_s3, 4 }
  0xe6   : > { %s3755_s21 = scalar_select %p3338_p1, 1, 0 }
  0xe7   : > { %s3754_s5 = scalar_select %p3333_p5, 1, 0 }
  0xe8   : > { %s3756_s4 = scalar_select %p3342_p8, 1, 0 }
  0xe9   : > { %s2156_s28 = sshll.u32 %s2945_s30, 8  ;;  %s3757_s1 = sld [smem:[#allocation35_spill]] }
  0xea   : > { %s444_s2 = scalar_lea.vmem [#allocation5], %s2042_s17  ;;  %p3758_p10 = scmp.lt.s32.totalorder %s2949_s13, 4 }
  0xeb   : > { %s451_s8 = sshll.u32 %s444_s2, 4  ;;  %s3760_s12 = sand.u32 1, %s2917_s23   ;;  %s3352_s8 = int_to_ptr.vmem [resolvable:$true] %s451_s8 }
  0xec   : > { %p3358_p12 = pnand %p3758_p10, %p3324_p3  ;;  %s3364_s18 = sshll.u32 %s3760_s12, 3 }
  0xed   : > { %s2051_s16 = sshll.u32 %s2945_s30, 1 }
  0xee   : > { %p2753_p7 = pneg %p3358_p12 }
  0xef   : > { %s3350_s20 = scalar_lea.hbm %s3757_s1, %s2156_s28  ;;  %s3367_s28 = scalar_lea.sflag [#allocation6], %s440_s3 }
  0xf0   : > { %s2751_s7 = scalar_lea.hbm %s3350_s20, 256  ;;  %s2756_s11 = scalar_lea.hbm %s3757_s1, 512 }
  0xf1   : > { %p2752_p11 = scmp.ne.s32.totalorder %s3350_s20, %s2751_s7  ;;  %p2757_p3 = scmp.lt.u32.totalorder %s3350_s20, %s3757_s1 }
  0xf2   : > { %p2758_p13 = scmp.lt.u32.totalorder %s2756_s11, %s2751_s7  ;;  %p2760_p9 = scmp.lt.u32.totalorder %s2751_s7, %s3350_s20 }
  0xf3   : > { %p2754_p6 = pnand %p2753_p7, %p2752_p11 }
  0xf4   : > { %p2759_p0 = por %p2758_p13, %p2757_p3 }
  0xf5   : > { %p2755_p4 = pneg %p2754_p6 }
  0xf6   : > { %p2761_p2 = por %p2760_p9, %p2759_p0 }
  0xf8   : > { %p2762_p10 = pnand %p2761_p2, %p2755_p4 }
  0xfa   : > { %2765 = shalt.err (!%p2762_p10)
}
  0xfb   : > { %s2766_s3 = scalar_lea.vmem %s3352_s8, 256  ;;  %s2961_s12 = smov [#allocation5]  }
  0xfc   : > { %p2767_p11 = scmp.ne.s32.totalorder %s3352_s8, %s2766_s3  ;;  %s2771_s15 = sshll.u32 %s2961_s12, 4  ;;  %s2772_s15 = int_to_ptr.vmem [resolvable:$false] %s2771_s15 }
  0xfd   : > { %s2773_s6 = scalar_lea.vmem %s2772_s15, 512  ;;  %p2774_p1 = scmp.lt.s32.totalorder %s3352_s8, %s2772_s15 }
  0xfe   : > { %p2769_p6 = pnand %p2767_p11, %p2753_p7  ;;  %p2775_p3 = scmp.lt.s32.totalorder %s2773_s6, %s2766_s3 }
 0x100   : > { %p2770_p8 = pneg %p2769_p6  ;;  %p2776_p13 = por %p2775_p3, %p2774_p1 }
 0x102   : > { %p2777_p0 = pnand %p2776_p13, %p2770_p8 }
 0x104   : > { %2780 = shalt.err (!%p2777_p0)
}
 0x105   : > { %s3761_s7 = smov 8   ;;  %s3762_s17 = smov 128  }
 0x106   : > { %2350 = dma.hbm_to_vmem [thread:$0]  (!%p3358_p12), %s3350_s20, 256, %s3352_s8, %s3367_s28, %s3762_s17, %s3762_s17, %s3761_s7  }
 0x107   : > { %s500_s11 = sadd.s32 %s2941_s29, %s2051_s16  ;;  %s495_s2 = scalar_lea.vmem [#allocation10], %s3364_s18 }
 0x108   : > { %s504_s3 = sshll.u32 %s495_s2, 4  ;;  %s2052_s12 = sshll.u32 %s500_s11, 7  ;;  %s505_s3 = int_to_ptr.vmem [resolvable:$true] %s504_s3 }
 0x109   : > { %s3763_s19 = sld [smem:[#allocation38_spill]]  ;;  %p3764_p8 = scmp.ne.s32.totalorder %s3741_s27, 0 }
 0x10b   : > { %p3765_p7 = pneg %p3764_p8 }
 0x10f   : > { %s502_s1 = scalar_lea.hbm %s3763_s19, %s2052_s12  ;;  %s2786_s20 = scalar_lea.hbm %s3763_s19, 512 }
 0x110   : > { %s2781_s9 = scalar_lea.hbm %s502_s1, 128  ;;  %p2787_p12 = scmp.lt.u32.totalorder %s502_s1, %s3763_s19 }
 0x111   : > { %p2782_p1 = scmp.ne.s32.totalorder %s502_s1, %s2781_s9  ;;  %p2788_p2 = scmp.lt.u32.totalorder %s2786_s20, %s2781_s9 }
 0x112   : > { %p2790_p11 = scmp.lt.u32.totalorder %s2781_s9, %s502_s1 }
 0x113   : > { %p2784_p4 = pnand %p2782_p1, %p3765_p7  ;;  %p2789_p10 = por %p2788_p2, %p2787_p12 }
 0x115   : > { %p2785_p9 = pneg %p2784_p4  ;;  %p2791_p6 = por %p2790_p11, %p2789_p10 }
 0x117   : > { %p2792_p3 = pnand %p2791_p6, %p2785_p9 }
 0x119   : > { %2795 = shalt.err (!%p2792_p3)
}
 0x11a   : > { %s2796_s18 = scalar_lea.vmem %s505_s3, 128  ;;  %p3766_p0 = pmov %p3765_p7 }
 0x11b   : > { %p2797_p13 = scmp.ne.s32.totalorder %s505_s3, %s2796_s18  ;;  %s2962_s28 = smov [#allocation10]  }
 0x11c   : > { %s2801_s10 = sshll.u32 %s2962_s28, 4  ;;  %s2802_s10 = int_to_ptr.vmem [resolvable:$false] %s2801_s10 }
 0x11d   : > { %p2799_p1 = pnand %p2797_p13, %p3766_p0  ;;  %s2803_s22 = scalar_lea.vmem %s2802_s10, 256 }
 0x11e   : > { %p2804_p4 = scmp.lt.s32.totalorder %s505_s3, %s2802_s10  ;;  %p2805_p5 = scmp.lt.s32.totalorder %s2803_s22, %s2796_s18 }
 0x11f   : > { %p2800_p7 = pneg %p2799_p1 }
 0x120   : > { %p2806_p2 = por %p2805_p5, %p2804_p4 }
 0x122   : > { %p2807_p12 = pnand %p2806_p2, %p2800_p7 }
 0x124   : > { %2810 = shalt.err (!%p2807_p12)
}
 0x125   : > { %2356 = dma.hbm_to_vmem [thread:$0]  (!%p3764_p8), %s502_s1, 128, %s505_s3, %s3218_s0  }
 0x126   : > { %s3767_s9 = sld [smem:[#allocation29_spill]] }
 0x12c   : > { %p3768_p9 = scmp.ne.s32.totalorder %s3767_s9, 0 }
 0x12d   : > { %s3423_s7 = sand.u32 (!%p3768_p9), 1, %s2925_s25   ;;  %p3769_p5 = scmp.ne.s32.totalorder (!%p3768_p9), %s3754_s5, 0 }
 0x12e   : > { %513 = sbr.rel (%p3768_p9) target bundleno = 1159 (0x487), region = 68  ;;  %s2054_s17 = sshll.u32 (!%p3768_p9), %s3423_s7, 4 }
 0x12f   : > { %s516_s11 = scalar_lea.sflag (!%p3768_p9), [#allocation6], %s3423_s7  ;;  %s3427_s2 = scalar_lea.vmem (!%p3768_p9), [#allocation5], %s2054_s17 }
 0x135   : > { %2884 = dma.done.wait (%p3769_p5), %s516_s11, 256  }
 0x136   : > { %2886 = vsyncadd (%p3769_p5), %s516_s11, 4294967040  ;;  %s3770_s27 = sld [smem:[#allocation26_spill]]  ;;  %s524_s1 = sand.u32 1, %s3093_s14  }
 0x137   : > { %s3771_s0 = sld [smem:[#allocation32_spill]]  ;;  %s525_s15 = scalar_lea.sflag [#allocation9], %s524_s1 }
 0x13c   : > { %s526_s3 = sand.u32 1, %s3770_s27  }
 0x13d   : > { %s2055_s12 = sshll.u32 %s526_s3, 6  ;;  %p3772_p8 = scmp.ne.s32.totalorder %s3771_s0, 0 }
 0x13e   : > { %s3435_s6 = scalar_lea.vmem [#allocation8], %s2055_s12 }
 0x13f   : > { %2888 = dma.done.wait (%p3772_p8), %s525_s15, 1152  }
 0x140   : > { %2890 = vsyncadd (%p3772_p8), %s525_s15, 4294966144  ;;  %s3441_s20 = sshll.u32 %s526_s3, 3  ;;  %p3773_p10 = scmp.eq.s32.totalorder %s3093_s14, 0 }
 0x141   : > { %s537_s5 = scalar_lea.vmem [#allocation10], %s3441_s20 }
 0x142   : > { %2892 = dma.done.wait (%p3773_p10), [#allocation12], 5120   ;;  %p3774_p11 = pmov %p3773_p10 }
 0x143   : > { %p3775_p6 = pmov %p3773_p10 }
 0x144   : > { %2894 = vsyncadd (%p3774_p11), [#allocation12], 4294962176 }
 0x145   : > { %2896 = dma.done.wait (%p3775_p6), [#allocation15], 3072   ;;  %p3776_p3 = pmov %p3775_p6 }
 0x147   : > { %2898 = vsyncadd (%p3776_p3), [#allocation15], 4294964224  ;;  %p3777_p13 = pmov %p3776_p3 }
 0x148   : > { %p3778_p0 = pmov %p3776_p3 }
 0x149   : > { %2900 = dma.done.wait (%p3777_p13), [#allocation18], 1024  }
 0x14a   : > { %2902 = vsyncadd (%p3778_p0), [#allocation18], 4294966272  ;;  %s3779_s8 = sld [smem:[#allocation28_spill]]  ;;  %s3780_s28 = sld [smem:[#allocation37_spill]] }
 0x14b   : > { %s3464_s22 = scalar_lea.vmem [#allocation19], %s2054_s17  ;;  %s3781_s9 = sld [smem:[#allocation27_spill]] }
 0x150   : > { %p612_p1 = scmp.lt.s32.totalorder %s3779_s8, 1 }
 0x151   : > { %p2063_p7 = scmp.ne.s32.totalorder %s3781_s9, 0 }
 0x152   : > { %s3812_s8 = smov (!%p612_p1, %s3779_s8), 1  ;;  %v2478_v0 = vld [vmem:[#allocation11 + $0x4] ss:$8 sps:$4 sm:$0xff] (!%p2063_p7)   ;;  %v2480_v1 = vld [vmem:[#allocation11] ss:$8 sps:$4 sm:$0xff] (!%p2063_p7)   ;;  %v2963_v2 = vmov (!%p2063_p7), 0.0   ;;  %v656_v49 = vlaneseq (!%p2063_p7) }
 0x153   : > { %s614_s10 = scalar_lea.vmem %s3780_s28, %s3812_s8  ;;  %619 = sbr.rel (%p2063_p7) target bundleno = 622 (0x26e), region = 104  ;;  %2215 = vmatprep.subr.bf16.mxu1 (!%p2063_p7), %v2963_v2  ;;  %vm2964_vm0 = vmmov (!%p2063_p7), 0   ;;  %836 = vmatprep.subr.bf16.mxu0 (!%p2063_p7), %v2478_v0  ;;  %v2481_v3 = vld [vmem:[#allocation11 + $0x14] ss:$8 sps:$4 sm:$0xff] (!%p2063_p7)   ;;  %v2483_v4 = vld [vmem:[#allocation11 + $0x10] ss:$8 sps:$4 sm:$0xff] (!%p2063_p7)  }
 0x154   : > { %2231 = vmatprep.mubr.msk.bf16.mxu1 (!%p2063_p7), %vm2964_vm0, %v2963_v2  ;;  %837 = vmatpush1.bf16.msra.mxu0 (!%p2063_p7), %v2480_v1  ;;  %v2484_v5 = vld [vmem:[#allocation11 + $0x24] ss:$8 sps:$4 sm:$0xff] (!%p2063_p7)   ;;  %v2486_v6 = vld [vmem:[#allocation11 + $0x20] ss:$8 sps:$4 sm:$0xff] (!%p2063_p7)   ;;  %v2487_v7 = vld [vmem:[#allocation11 + $0x34] ss:$8 sps:$4 sm:$0xff] (!%p2063_p7)  }
 0x155   : > { %838 = vmatprep.subr.bf16.mxu0 (!%p2063_p7), %v2481_v3  ;;  %v2489_v8 = vld [vmem:[#allocation11 + $0x30] ss:$8 sps:$4 sm:$0xff] (!%p2063_p7)   ;;  %v2502_v9 = vld [vmem:[#allocation13] sm:$0xff] (!%p2063_p7)   ;;  %v2506_v11 = vld [vmem:[#allocation13 + $0x8] sm:$0xff] (!%p2063_p7)   ;;  %v2965_v44 = vmov (!%p2063_p7), -1e+09  }
 0x156   : > { %v2490_v10 = vld [vmem:[#allocation11 + $0x44] ss:$8 sps:$4 sm:$0xff] (!%p2063_p7)   ;;  %2216 = vmatpush3.bf16.msra.mxu1 (!%p2063_p7), %v2502_v9  ;;  %v2492_v12 = vld [vmem:[#allocation11 + $0x40] ss:$8 sps:$4 sm:$0xff] (!%p2063_p7)   ;;  %v2493_v13 = vld [vmem:[#allocation11 + $0x54] ss:$8 sps:$4 sm:$0xff] (!%p2063_p7)  }
 0x157   : > { %2217 = vmatprep.subr.bf16.mxu1 (!%p2063_p7), %v2963_v2  ;;  %v2510_v14 = vld [vmem:[#allocation13 + $0x10] sm:$0xff] (!%p2063_p7)   ;;  %v2496_v16 = vld [vmem:[#allocation11 + $0x64] ss:$8 sps:$4 sm:$0xff] (!%p2063_p7)   ;;  %v2514_v17 = vld [vmem:[#allocation13 + $0x18] sm:$0xff] (!%p2063_p7)   ;;  %995 = vst [vmem:[#allocation4] sm:$0xff] (!%p2063_p7), %v2965_v44  ;;  %v657_v50 = vshrl.u32 (!%p2063_p7), %v656_v49, 7 }
 0x158   : > { %839 = vmatpush1.bf16.msra.mxu0 (!%p2063_p7), %v2483_v4  ;;  %v2495_v15 = vld [vmem:[#allocation11 + $0x50] ss:$8 sps:$4 sm:$0xff] (!%p2063_p7)   ;;  %v2498_v18 = vld [vmem:[#allocation11 + $0x60] ss:$8 sps:$4 sm:$0xff] (!%p2063_p7)   ;;  %v2499_v19 = vld [vmem:[#allocation11 + $0x74] ss:$8 sps:$4 sm:$0xff] (!%p2063_p7)  }
 0x159   : > { %840 = vmatprep.subr.bf16.mxu0 (!%p2063_p7), %v2484_v5  ;;  %v2518_v20 = vld [vmem:[#allocation13 + $0x20] sm:$0xff] (!%p2063_p7)   ;;  %v2501_v21 = vld [vmem:[#allocation11 + $0x70] ss:$8 sps:$4 sm:$0xff] (!%p2063_p7)   ;;  %v2522_v23 = vld [vmem:[#allocation13 + $0x28] sm:$0xff] (!%p2063_p7)   ;;  %996 = vst [vmem:[#allocation4 + $0x8] sm:$0xff] (!%p2063_p7), %v2965_v44  ;;  %s3783_s1 = sld [smem:[#allocation42_spill]] (!%p2063_p7) }
 0x15a   : > { %2218 = vmatpush3.bf16.msra.mxu1 %v2506_v11  ;;  %v2503_v22 = vld [vmem:[#allocation11 + $0x84] ss:$8 sps:$4 sm:$0xff]   ;;  %v2505_v25 = vld [vmem:[#allocation11 + $0x80] ss:$8 sps:$4 sm:$0xff]   ;;  %v2507_v26 = vld [vmem:[#allocation11 + $0x94] ss:$8 sps:$4 sm:$0xff]  }
 0x15b   : > { %2219 = vmatprep.subr.bf16.mxu1 %v2963_v2  ;;  %v2536_v24 = vld [vmem:[%s3427_s2 + $0x4] ss:$8 sps:$4 sm:$0xff]   ;;  %v2509_v28 = vld [vmem:[#allocation11 + $0x90] ss:$8 sps:$4 sm:$0xff]   ;;  %v2513_v31 = vld [vmem:[#allocation11 + $0xa0] ss:$8 sps:$4 sm:$0xff]  }
 0x15c   : > { %841 = vmatpush1.bf16.msra.mxu0 %v2486_v6  ;;  %868 = vmatprep.mubr.bf16.mxu0 %v2536_v24  ;;  %v2526_v27 = vld [vmem:[#allocation13 + $0x30] sm:$0xff]   ;;  %v2511_v29 = vld [vmem:[#allocation11 + $0xa4] ss:$8 sps:$4 sm:$0xff]   ;;  %v2530_v30 = vld [vmem:[#allocation13 + $0x38] sm:$0xff]   ;;  %v658_v52 = vsub.s32 0, %v657_v50  ;;  %s3784_s15 = sld [smem:[#allocation40_spill]] }
 0x15d   : > { %842 = vmatprep.subr.bf16.mxu0 %v2487_v7  ;;  %v2515_v32 = vld [vmem:[#allocation11 + $0xb4] ss:$8 sps:$4 sm:$0xff]   ;;  %v879_v33 = vld [vmem:[%s614_s10] sm:$0x1]  ;;  %v2517_v34 = vld [vmem:[#allocation11 + $0xb0] ss:$8 sps:$4 sm:$0xff]  }
 0x15e   : > { %2220 = vmatpush3.bf16.msra.mxu1 %v2510_v14  ;;  %v2519_v35 = vld [vmem:[#allocation11 + $0xc4] ss:$8 sps:$4 sm:$0xff]   ;;  %v2521_v36 = vld [vmem:[#allocation11 + $0xc0] ss:$8 sps:$4 sm:$0xff]   ;;  %v2523_v37 = vld [vmem:[#allocation11 + $0xd4] ss:$8 sps:$4 sm:$0xff]  }
 0x15f   : > { %2221 = vmatprep.subr.bf16.mxu1 %v2963_v2  ;;  %v2525_v38 = vld [vmem:[#allocation11 + $0xd0] ss:$8 sps:$4 sm:$0xff]   ;;  %v2527_v39 = vld [vmem:[#allocation11 + $0xe4] ss:$8 sps:$4 sm:$0xff]   ;;  %v2529_v40 = vld [vmem:[#allocation11 + $0xe0] ss:$8 sps:$4 sm:$0xff]  }
 0x160   : > { %843 = vmatpush1.bf16.msra.mxu0 %v2489_v8  ;;  %v2531_v41 = vld [vmem:[#allocation11 + $0xf4] ss:$8 sps:$4 sm:$0xff]   ;;  %v2533_v42 = vld [vmem:[#allocation11 + $0xf0] ss:$8 sps:$4 sm:$0xff]   ;;  %v896_v51 = vld [vmem:[%s3783_s1] sm:$0x1] }
 0x161   : > { %844 = vmatprep.subr.bf16.mxu0 %v2490_v10  ;;  %v2534_v43 = vld [vmem:[%s3427_s2] ss:$8 sps:$4 sm:$0xff]   ;;  %v662_v54 = vsub.s32 1, %v657_v50 }
 0x162   : > { %2222 = vmatpush3.bf16.msra.mxu1 %v2514_v17  ;;  %v654_v53 = vld [vmem:[%s3784_s15] sm:$0x3] }
 0x163   : > { %2223 = vmatprep.subr.bf16.mxu1 %v2963_v2  ;;  %v659_v56 = vrot.slane %v654_v53, %v658_v52  ;;  %v663_v57 = vrot.slane %v654_v53, %v662_v54 }
 0x164   : > { %845 = vmatpush1.bf16.msra.mxu0 %v2492_v12 }
 0x165   : > { %846 = vmatprep.subr.bf16.mxu0 %v2493_v13 }
 0x166   : > { %2224 = vmatpush3.bf16.msra.mxu1 %v2518_v20 }
 0x167   : > { %2225 = vmatprep.subr.bf16.mxu1 %v2963_v2 }
 0x168   : > { %847 = vmatpush1.bf16.msra.mxu0 %v2495_v15 }
 0x169   : > { %848 = vmatprep.subr.bf16.mxu0 %v2496_v16 }
 0x16a   : > { %2226 = vmatpush3.bf16.msra.mxu1 %v2522_v23 }
 0x16b   : > { %2227 = vmatprep.subr.bf16.mxu1 %v2963_v2 }
 0x16c   : > { %849 = vmatpush1.bf16.msra.mxu0 %v2498_v18 }
 0x16d   : > { %850 = vmatprep.subr.bf16.mxu0 %v2499_v19 }
 0x16e   : > { %2228 = vmatpush3.bf16.msra.mxu1 %v2526_v27 }
 0x16f   : > { %2229 = vmatprep.subr.bf16.mxu1 %v2963_v2 }
 0x170   : > { %851 = vmatpush1.bf16.msra.mxu0 %v2501_v21 }
 0x171   : > { %852 = vmatprep.subr.bf16.mxu0 %v2503_v22 }
 0x172   : > { %2230 = vmatpush3.bf16.msra.mxu1 %v2530_v30 }
 0x174   : > { %853 = vmatpush1.bf16.msra.mxu0 %v2505_v25 }
 0x175   : > { %854 = vmatprep.subr.bf16.mxu0 %v2507_v26  ;;  %2232 = vmatmul.mubr.bf16.vlgmr.msra.gmra.mrb[0].mxu1 %v879_v33 }
 0x178   : > { %855 = vmatpush1.bf16.msra.mxu0 %v2509_v28 }
 0x179   : > { %856 = vmatprep.subr.bf16.mxu0 %v2511_v29 }
 0x17c   : > { %857 = vmatpush1.bf16.msra.mxu0 %v2513_v31 }
 0x17d   : > { %858 = vmatprep.subr.bf16.mxu0 %v2515_v32 }
 0x180   : > { %859 = vmatpush1.bf16.msra.mxu0 %v2517_v34 }
 0x181   : > { %860 = vmatprep.subr.bf16.mxu0 %v2519_v35 }
 0x184   : > { %861 = vmatpush1.bf16.msra.mxu0 %v2521_v36 }
 0x185   : > { %862 = vmatprep.subr.bf16.mxu0 %v2523_v37 }
 0x188   : > { %863 = vmatpush1.bf16.msra.mxu0 %v2525_v38 }
 0x189   : > { %864 = vmatprep.subr.bf16.mxu0 %v2527_v39 }
 0x18c   : > { %865 = vmatpush1.bf16.msra.mxu0 %v2529_v40 }
 0x18d   : > { %866 = vmatprep.subr.bf16.mxu0 %v2531_v41 }
 0x190   : > { %867 = vmatpush1.bf16.msra.mxu0 %v2533_v42 }
 0x193   : > { %869 = vmatmul.mubr.bf16.vlgmr.msra.gmra.mrb[0].mxu0 %v2534_v43 }
 0x248   : > { %v979_v45 = vpop.f32.mrb[0].mxu1 }
 0x249   : > { %v2233_v46 = vpop.f32.mrb[1].mxu1  ;;  %v980_v55 = vadd.f32 %v979_v45, %v896_v51 }
 0x24a   : > { %v982_v47 = vpop.f32.mrb[2].mxu1 }
 0x24b   : > { %v2234_v48 = vpop.f32.mrb[3].mxu1  ;;  %v988_v58 = vrot.slane %v980_v55, %v658_v52 }
 0x266   : > { %v870_v59 = vpop.f32.mrb[0].mxu0 }
 0x267   : > { %v871_v60 = vadd.f32 %v870_v59, %v659_v56  ;;  %v872_v61 = vpop.f32.mrb[1].mxu0 }
 0x268   : > { %v873_v62 = vadd.f32 %v872_v61, %v663_v57  ;;  %v874_v63 = vpop.f32.mrb[2].mxu0 }
 0x269   : > { %v989_v0 = vadd.f32 %v988_v58, %v871_v60  ;;  %v875_v1 = vadd.f32 %v874_v63, %v659_v56  ;;  %v876_v2 = vpop.f32.mrb[3].mxu0 }
 0x26a   : > { %993 = vst [vmem:[#allocation3] sm:$0xff] %v873_v62  ;;  %v877_v3 = vadd.f32 %v876_v2, %v663_v57 }
 0x26b   : > { %991 = vst [vmem:[#allocation2] sm:$0xff] %v989_v0  ;;  %v990_v4 = vadd.f32 %v988_v58, %v875_v1 }
 0x26c   : > { %994 = vst [vmem:[#allocation3 + $0x8] sm:$0xff] %v877_v3 }
 0x26d   : > { %992 = vst [vmem:[#allocation2 + $0x8] sm:$0xff] %v990_v4 }
 0x26e PF: > { %v2537_v5 = vld [vmem:[#allocation14] sm:$0xff]   ;;  %v2538_v6 = vld [vmem:[#allocation14 + $0x8] sm:$0xff]   ;;  %v2539_v7 = vld [vmem:[#allocation14 + $0x10] sm:$0xff]   ;;  %v1232_v8 = vlaneseq  ;;  %s3785_s20 = sld [smem:[#allocation27_spill]]  ;;  %v2966_v44 = vmov 1966171168  }
 0x26f   : > { %2235 = vmatprep.subr.bf16.mxu0 %v2537_v5  ;;  %2287 = vmatprep.subr.bf16.mxu1 %v2537_v5  ;;  %v2540_v9 = vld [vmem:[#allocation14 + $0x18] sm:$0xff]   ;;  %v2545_v10 = vld [vmem:[%s3435_s6] sm:$0xff]   ;;  %v2541_v13 = vld [vmem:[#allocation14 + $0x20] sm:$0xff]   ;;  %v1230_v45 = vunpack.c.l.s4 %v2966_v44 }
 0x270   : > { %2236 = vmatpush3.bf16.msra.mxu0 %v2537_v5  ;;  %2295 = vmatpush3.bf16.msra.mxu1 %v2537_v5  ;;  %v2546_v11 = vld [vmem:[%s3435_s6 + $0x20] sm:$0xff]   ;;  %v3491_v12 = vshrl.u32 %v1232_v8, 7  ;;  %v2542_v16 = vld [vmem:[#allocation14 + $0x28] sm:$0xff]   ;;  %v2544_v22 = vld [vmem:[#allocation14 + $0x38] sm:$0xff]  }
 0x271   : > { %2237 = vmatprep.subr.bf16.mxu0 %v2538_v6  ;;  %2288 = vmatprep.subr.bf16.mxu1 %v2538_v6  ;;  %v1349_v17 = vld [vmem:[%s537_s5] sm:$0xff]  ;;  %v2549_v29 = vld [vmem:[%s3435_s6 + $0x10] sm:$0xff]   ;;  %v2551_v35 = vld [vmem:[%s3435_s6 + $0x18] sm:$0xff]   ;;  %v1231_v48 = vunpack.c.0.s8 %v1230_v45 }
 0x272   : > { %2251 = vmatprep.mubr.bf16.mxu0 %v2545_v10  ;;  %2259 = vmatprep.mubr.bf16.mxu1 %v2546_v11  ;;  %v1363_v14 = vsub.s32 1, %v3491_v12  ;;  %v3495_v15 = vsub.s32 0, %v3491_v12  ;;  %v2543_v20 = vld [vmem:[#allocation14 + $0x30] sm:$0xff]   ;;  %v1374_v21 = vsub.s32 2, %v3491_v12  ;;  %v1385_v24 = vsub.s32 3, %v3491_v12  ;;  %v2547_v27 = vld [vmem:[%s3435_s6 + $0x8] sm:$0xff]  }
 0x273   : > { %v1396_v26 = vsub.s32 4, %v3491_v12  ;;  %v2548_v28 = vld [vmem:[%s3435_s6 + $0x28] sm:$0xff]   ;;  %v2550_v30 = vld [vmem:[%s3435_s6 + $0x30] sm:$0xff]   ;;  %v1407_v32 = vsub.s32 5, %v3491_v12  ;;  %v1418_v34 = vsub.s32 6, %v3491_v12  ;;  %v2552_v36 = vld [vmem:[%s3435_s6 + $0x38] sm:$0xff]   ;;  %v1234_v49 = vsub.s32 %v1231_v48, %v3491_v12 }
 0x274   : > { %2238 = vmatpush3.bf16.msra.mxu0 %v2538_v6  ;;  %2296 = vmatpush3.bf16.msra.mxu1 %v2538_v6  ;;  %v1364_v18 = vrot.slane %v1349_v17, %v1363_v14  ;;  %v1353_v19 = vrot.slane %v1349_v17, %v3495_v15  ;;  %v1375_v23 = vrot.slane %v1349_v17, %v1374_v21  ;;  %v1429_v38 = vsub.s32 7, %v3491_v12  ;;  %s2122_s6 = sshll.u32 %s3785_s20, 3  ;;  %v1226_v11 = vld [vmem:[#allocation2 + $0x8] sm:$0xff]  ;;  %p2123_p4 = scmp.ne.s32.totalorder %s3785_s20, 1 }
 0x275   : > { %2239 = vmatprep.subr.bf16.mxu0 %v2539_v7  ;;  %2289 = vmatprep.subr.bf16.mxu1 %v2539_v7  ;;  %v1386_v25 = vrot.slane %v1349_v17, %v1385_v24  ;;  %v1397_v31 = vrot.slane %v1349_v17, %v1396_v26  ;;  %v1408_v33 = vrot.slane %v1349_v17, %v1407_v32  ;;  %s1223_s5 = scalar_lea.vmem [#allocation3], %s2122_s6  ;;  %s3786_s18 = sld [smem:[#allocation46_spill]] (!%p2123_p4) }
 0x276   : > { %1366 = vbcast.lane.b32.xlu1 %v1364_v18, 256  ;;  %1355 = vbcast.lane.b32.xlu0 %v1353_v19, 256  ;;  %v1419_v37 = vrot.slane %v1349_v17, %v1418_v34  ;;  %v1430_v39 = vrot.slane %v1349_v17, %v1429_v38  ;;  %v1224_v50 = vld [vmem:[%s1223_s5] sm:$0xff] }
 0x277   : > { %v1228_v53 = vcombine.high %v1224_v50, %v1224_v50  ;;  %v1235_v54 = vrot.slane %v1224_v50, %v1234_v49 }
 0x278   : > { %2240 = vmatpush3.bf16.msra.mxu0 %v2539_v7  ;;  %2297 = vmatpush3.bf16.msra.mxu1 %v2539_v7  ;;  %v1225_v7 = vld [vmem:[#allocation2] sm:$0xff] }
 0x279   : > { %2241 = vmatprep.subr.bf16.mxu0 %v2540_v9  ;;  %2290 = vmatprep.subr.bf16.mxu1 %v2540_v9  ;;  %v1242_v55 = vrot.slane %v1228_v53, %v1234_v49  ;;  %v1243_v56 = vcombine.high %v1235_v54, %v1235_v54  ;;  %v1251_v61 = vrot.slane %v1235_v54, %v1234_v49 }
 0x27a   : > { %1370 = vbcast.lane.b32.xlu1 %v1364_v18, 264  ;;  %1359 = vbcast.lane.b32.xlu0 %v1353_v19, 264 }
 0x27b   : > { %v1244_v59 = vcombine.high %v1242_v55, %v1242_v55  ;;  %v1265_v60 = vrot.slane %v1243_v56, %v1234_v49  ;;  %v1258_v62 = vrot.slane %v1242_v55, %v1234_v49  ;;  %v1273_v3 = vcombine.high %v1251_v61, %v1251_v61 }
 0x27c   : > { %2242 = vmatpush3.bf16.msra.mxu0 %v2540_v9  ;;  %2298 = vmatpush3.bf16.msra.mxu1 %v2540_v9  ;;  %v1280_v8 = vrot.slane %v1251_v61, %v3495_v15 }
 0x27d   : > { %2243 = vmatprep.subr.bf16.mxu0 %v2541_v13  ;;  %2291 = vmatprep.subr.bf16.mxu1 %v2541_v13  ;;  %v1272_v63 = vrot.slane %v1244_v59, %v1234_v49  ;;  %v1275_v2 = vcombine.high %v1265_v60, %v1265_v60  ;;  %v1274_v4 = vcombine.high %v1258_v62, %v1258_v62 }
 0x27e   : > { %1381 = vbcast.lane.b32.xlu1 %v1375_v23, 264  ;;  %1377 = vbcast.lane.b32.xlu0 %v1375_v23, 256  ;;  %v1284_v5 = vrot.slane %v1265_v60, %v3495_v15  ;;  %v1296_v9 = vrot.slane %v1258_v62, %v3495_v15 }
 0x27f   : > { %v1276_v6 = vcombine.high %v1272_v63, %v1272_v63  ;;  %v1300_v10 = vrot.slane %v1272_v63, %v3495_v15  ;;  %v1292_v12 = vrot.slane %v1275_v2, %v3495_v15  ;;  %v1304_v14 = vrot.slane %v1274_v4, %v3495_v15 }
 0x280   : > { %2244 = vmatpush3.bf16.msra.mxu0 %v2541_v13  ;;  %2299 = vmatpush3.bf16.msra.mxu1 %v2541_v13  ;;  %v1288_v13 = vrot.slane %v1273_v3, %v3495_v15  ;;  %v1325_v23 = vadd.f32 %v1296_v9, %v1225_v7  ;;  %v1320_v24 = vadd.f32 %v1284_v5, %v1226_v11 }
 0x281   : > { %2245 = vmatprep.subr.bf16.mxu0 %v2542_v16  ;;  %2292 = vmatprep.subr.bf16.mxu1 %v2542_v16  ;;  %v1308_v17 = vrot.slane %v1276_v6, %v3495_v15  ;;  %v1327_v26 = vadd.f32 %v1300_v10, %v1225_v7  ;;  %v1329_v15 = vadd.f32 %v1304_v14, %v1225_v7 }
 0x282   : > { %1392 = vbcast.lane.b32.xlu1 %v1386_v25, 264  ;;  %1388 = vbcast.lane.b32.xlu0 %v1386_v25, 256  ;;  %v1318_v25 = vadd.f32 %v1280_v8, %v1226_v11  ;;  %v1321_v34 = vadd.f32 %v1288_v13, %v1225_v7  ;;  %v1330_v44 = vadd.f32 %v1304_v14, %v1226_v11 }
 0x283   : > { %v1332_v62 = vadd.f32 %v1308_v17, %v1226_v11 }
 0x284   : > { %2246 = vmatpush3.bf16.msra.mxu0 %v2542_v16  ;;  %2300 = vmatpush3.bf16.msra.mxu1 %v2542_v16  ;;  %v1319_v16 = vadd.f32 %v1284_v5, %v1225_v7 }
 0x285   : > { %2247 = vmatprep.subr.bf16.mxu0 %v2543_v20  ;;  %2293 = vmatprep.subr.bf16.mxu1 %v2543_v20 }
 0x286   : > { %1403 = vbcast.lane.b32.xlu1 %v1397_v31, 264  ;;  %1399 = vbcast.lane.b32.xlu0 %v1397_v31, 256  ;;  %v1323_v31 = vadd.f32 %v1292_v12, %v1225_v7 }
 0x288   : > { %2248 = vmatpush3.bf16.msra.mxu0 %v2543_v20  ;;  %2301 = vmatpush3.bf16.msra.mxu1 %v2543_v20 }
 0x289   : > { %2249 = vmatprep.subr.bf16.mxu0 %v2544_v22  ;;  %2294 = vmatprep.subr.bf16.mxu1 %v2544_v22 }
 0x28a   : > { %1414 = vbcast.lane.b32.xlu1 %v1408_v33, 264  ;;  %1410 = vbcast.lane.b32.xlu0 %v1408_v33, 256 }
 0x28c   : > { %2250 = vmatpush3.bf16.msra.mxu0 %v2544_v22  ;;  %2302 = vmatpush3.bf16.msra.mxu1 %v2544_v22  ;;  %v1317_v22 = vadd.f32 %v1280_v8, %v1225_v7 }
 0x28e   : > { %1425 = vbcast.lane.b32.xlu1 %v1419_v37, 264  ;;  %1421 = vbcast.lane.b32.xlu0 %v1419_v37, 256 }
 0x28f   : > { %2252 = vmatmul.mubr.bf16.vlgmr.msra.gmra.mrb[0].mxu0 %v2547_v27  ;;  %2260 = vmatmul.mubr.bf16.vlgmr.msra.gmra.mrb[0].mxu1 %v2548_v28 }
 0x290   : > { %2255 = vmatprep.mubr.bf16.mxu0 %v2549_v29  ;;  %2263 = vmatprep.mubr.bf16.mxu1 %v2550_v30  ;;  %v1328_v29 = vadd.f32 %v1300_v10, %v1226_v11  ;;  %v1326_v30 = vadd.f32 %v1296_v9, %v1226_v11 }
 0x292   : > { %1436 = vbcast.lane.b32.xlu1 %v1430_v39, 264  ;;  %1432 = vbcast.lane.b32.xlu0 %v1430_v39, 256  ;;  %v1331_v39 = vadd.f32 %v1308_v17, %v1225_v7 }
 0x297   : > { %2256 = vmatmul.mubr.bf16.gmra.mrb[4].mxu0 %v2551_v35  ;;  %2264 = vmatmul.mubr.bf16.gmra.mrb[4].mxu1 %v2552_v36  ;;  %v1324_v35 = vadd.f32 %v1292_v12, %v1226_v11  ;;  %v1322_v36 = vadd.f32 %v1288_v13, %v1226_v11 }
 0x2e8   : > { %v3512_v40 = vpop.permute.xlu1 %1366  ;;  %v3514_v41 = vpop.permute.xlu0 %1355 }
 0x2e9   : > { %vm1440_vm1 = vcmp.gt.f32.partialorder %v3512_v40, 0.5  ;;  %vm1438_vm2 = vcmp.gt.f32.partialorder %v3514_v41, 0.5 }
 0x2ec   : > { %v3516_v42 = vpop.permute.xlu1 %1370  ;;  %v3518_v43 = vpop.permute.xlu0 %1359 }
 0x2ed   : > { %vm1441_vm3 = vcmp.gt.f32.partialorder %v3516_v42, 0.5  ;;  %vm1439_vm4 = vcmp.gt.f32.partialorder %v3518_v43, 0.5 }
 0x2f0   : > { %v3521_v46 = vpop.permute.xlu1 %1381  ;;  %v3523_v47 = vpop.permute.xlu0 %1377 }
 0x2f1   : > { %vm1442_vm5 = vcmp.gt.f32.partialorder %v3523_v47, 0.5  ;;  %vm1443_vm6 = vcmp.gt.f32.partialorder %v3521_v46, 0.5 }
 0x2f4   : > { %v3526_v51 = vpop.permute.xlu1 %1392  ;;  %v3528_v52 = vpop.permute.xlu0 %1388 }
 0x2f5   : > { %vm1445_vm7 = vcmp.gt.f32.partialorder %v3526_v51, 0.5  ;;  %vm1444_vm8 = vcmp.gt.f32.partialorder %v3528_v52, 0.5 }
 0x2f8   : > { %v3530_v57 = vpop.permute.xlu1 %1403  ;;  %v3532_v58 = vpop.permute.xlu0 %1399 }
 0x2f9   : > { %vm1447_vm9 = vcmp.gt.f32.partialorder %v3530_v57, 0.5  ;;  %vm1446_vm11 = vcmp.gt.f32.partialorder %v3532_v58, 0.5  ;;  %v2554_v57 = vld [vmem:[#allocation16 + $0x40] sm:$0xff] (!%p2123_p4)  }
 0x2fa   : > { %2193 = vmatprep.subr.bf16.mxu1 (!%p2123_p4), %v2554_v57 }
 0x2fc   : > { %v3534_v0 = vpop.permute.xlu1 %1414  ;;  %v3536_v1 = vpop.permute.xlu0 %1410 }
 0x2fd   : > { %vm1448_vm10 = vcmp.gt.f32.partialorder %v3536_v1, 0.5  ;;  %vm1449_vm12 = vcmp.gt.f32.partialorder %v3534_v0, 0.5  ;;  %v1516_v0 = vld [vmem:[#allocation4] sm:$0xff] }
 0x300   : > { %v3546_v18 = vpop.permute.xlu1 %1425  ;;  %v3548_v19 = vpop.permute.xlu0 %1421 }
 0x301   : > { %vm1450_vm13 = vcmp.gt.f32.partialorder %v3548_v19, 0.5  ;;  %vm1451_vm0 = vcmp.gt.f32.partialorder %v3546_v18, 0.5  ;;  %v1517_v18 = vld [vmem:[#allocation4 + $0x8] sm:$0xff]  ;;  %v2967_v19 = vmov (!%p2123_p4), 0.0  }
 0x302   : > { %2267 = vmatprep.subr.bf16.mxu0 (!%p2123_p4), %v2967_v19 }
 0x304   : > { %v1437_v50 = vpop.permute.xlu1 %1436  ;;  %v1433_v53 = vpop.permute.xlu0 %1432 }
 0x305   : > { %vm1453_vm14 = vcmp.gt.f32.partialorder %v1437_v50, 0.5  ;;  %vm1452_vm15 = vcmp.gt.f32.partialorder %v1433_v53, 0.5  ;;  %v2559_v50 = vld [vmem:[#allocation16 + $0x8] sm:$0xff] (!%p2123_p4)   ;;  %v2560_v53 = vld [vmem:[#allocation16 + $0x50] sm:$0xff] (!%p2123_p4)  }
 0x362   : > { %v2253_v20 = vpop.f32.mrb[0].mxu0  ;;  %v2261_v21 = vpop.f32.mrb[0].mxu1 }
 0x363   : > { %v1159_v27 = vpop.f32.mrb[1].mxu0  ;;  %v1191_v28 = vpop.f32.mrb[1].mxu1  ;;  %v1335_v45 = vadd.f32 %v2253_v20, %v1319_v16  ;;  %v1343_v48 = vadd.f32 %v2261_v21, %v1327_v26 }
 0x364   : > { %v2254_v32 = vpop.f32.mrb[2].mxu0  ;;  %v2262_v33 = vpop.f32.mrb[2].mxu1  ;;  %v1333_v49 = vadd.f32 %v1317_v22, %v1159_v27  ;;  %v1341_v54 = vadd.f32 %v1325_v23, %v1191_v28 }
 0x365   : > { %v1162_v37 = vpop.f32.mrb[3].mxu0  ;;  %v1194_v38 = vpop.f32.mrb[3].mxu1  ;;  %v1336_v55 = vadd.f32 %v2254_v32, %v1320_v24  ;;  %v1488_v59 = vsel %vm1440_vm1, %v1335_v45, -1e+09  ;;  %v1496_v2 = vsel %vm1448_vm10, %v1343_v48, -1e+09  ;;  %v1344_v7 = vadd.f32 %v2262_v33, %v1328_v29 }
 0x366   : > { %v1334_v56 = vadd.f32 %v1318_v25, %v1162_v37  ;;  %v1486_v63 = vsel %vm1438_vm2, %v1333_v49, -1e+09  ;;  %v1494_v6 = vsel %vm1446_vm11, %v1341_v54, -1e+09  ;;  %v1342_v41 = vadd.f32 %v1326_v30, %v1194_v38  ;;  %v2556_v45 = vld [vmem:[#allocation16] sm:$0xff] (!%p2123_p4)   ;;  %v2557_v48 = vld [vmem:[#allocation16 + $0x48] sm:$0xff] (!%p2123_p4)  }
 0x367   : > { %v1489_v40 = vsel %vm1441_vm3, %v1336_v55, -1e+09  ;;  %v1497_v27 = vsel %vm1449_vm12, %v1344_v7, -1e+09  ;;  %vm2968_vm1 = vmmov (!%p2123_p4), 0   ;;  %2194 = vmatpush3.bf16.msra.mxu1 (!%p2123_p4), %v2556_v45  ;;  %v2558_v49 = vld [vmem:[#allocation17 + $0x8] sm:$0xff] (!%p2123_p4)  }
 0x368   : > { %v1487_v11 = vsel %vm1439_vm4, %v1334_v56, -1e+09  ;;  %v1495_v51 = vsel %vm1447_vm9, %v1342_v41, -1e+09  ;;  %2283 = vmatprep.mubr.msk.bf16.mxu0 (!%p2123_p4), %vm2968_vm1, %v2967_v19  ;;  %2195 = vmatprep.subr.bf16.mxu1 (!%p2123_p4), %v2557_v48  ;;  %v2561_v54 = vld [vmem:[#allocation17 + $0x10] sm:$0xff] (!%p2123_p4)   ;;  %v2563_v56 = vld [vmem:[#allocation16 + $0x58] sm:$0xff] (!%p2123_p4)  }
 0x369   : > { %v2562_v55 = vld [vmem:[#allocation16 + $0x10] sm:$0xff] (!%p2123_p4)  }
 0x36a   : > { %v2257_v60 = vpop.f32.mrb[4].mxu0  ;;  %v2265_v61 = vpop.f32.mrb[4].mxu1  ;;  %v2580_v7 = vld [vmem:[%s3427_s2 + $0x4] ss:$8 sps:$4 sm:$0xff] (!%p2123_p4)  }
 0x36b   : > { %v1339_v1 = vadd.f32 %v2257_v60, %v1323_v31  ;;  %v1347_v3 = vadd.f32 %v2265_v61, %v1331_v39  ;;  %v1175_v4 = vpop.f32.mrb[5].mxu0  ;;  %v1207_v5 = vpop.f32.mrb[5].mxu1  ;;  %2196 = vmatpush3.bf16.msra.mxu1 (!%p2123_p4), %v2559_v50  ;;  %v2565_v60 = vld [vmem:[#allocation16 + $0x18] sm:$0xff] (!%p2123_p4)   ;;  %v2566_v61 = vld [vmem:[#allocation16 + $0x60] sm:$0xff] (!%p2123_p4)   ;;  %1806 = vmatprep.mubr.bf16.mxu1 (!%p2123_p4), %v2580_v7 }
 0x36c   : > { %v1337_v8 = vadd.f32 %v1321_v34, %v1175_v4  ;;  %v2258_v9 = vpop.f32.mrb[6].mxu0  ;;  %v2266_v10 = vpop.f32.mrb[6].mxu1  ;;  %v1345_v42 = vadd.f32 %v1329_v15, %v1207_v5  ;;  %2197 = vmatprep.subr.bf16.mxu1 (!%p2123_p4), %v2560_v53  ;;  %v2572_v4 = vld [vmem:[#allocation16 + $0x70] sm:$0xff] (!%p2123_p4)  }
 0x36d   : > { %v1492_v12 = vsel %vm1444_vm8, %v1339_v1, -1e+09  ;;  %v1340_v13 = vadd.f32 %v2258_v9, %v1324_v35  ;;  %v1178_v14 = vpop.f32.mrb[7].mxu0  ;;  %v1210_v16 = vpop.f32.mrb[7].mxu1  ;;  %v1348_v23 = vadd.f32 %v2266_v10, %v1332_v62  ;;  %v1500_v43 = vsel %vm1452_vm15, %v1347_v3, -1e+09 }
 0x36e   : > { %v1503_v17 = vmax.f32 %v1488_v59, %v1492_v12  ;;  %v1490_v58 = vsel %vm1442_vm5, %v1337_v8, -1e+09  ;;  %v1338_v20 = vadd.f32 %v1322_v36, %v1178_v14  ;;  %v1346_v25 = vadd.f32 %v1330_v44, %v1210_v16  ;;  %v2555_v44 = vld [vmem:[#allocation17] sm:$0xff] (!%p2123_p4)   ;;  %v2564_v59 = vld [vmem:[#allocation17 + $0x18] sm:$0xff] (!%p2123_p4)   ;;  %v2570_v1 = vld [vmem:[#allocation17 + $0x28] sm:$0xff] (!%p2123_p4)  }
 0x36f   : > { %v1502_v21 = vmax.f32 %v1486_v63, %v1490_v58  ;;  %v1493_v22 = vsel %vm1445_vm7, %v1340_v13, -1e+09  ;;  %v1498_v29 = vsel %vm1450_vm13, %v1345_v42, -1e+09  ;;  %v1501_v33 = vsel %vm1453_vm14, %v1348_v23, -1e+09  ;;  %2268 = vmatpush3.bf16.msra.mxu0 (!%p2123_p4), %v2555_v44  ;;  %2198 = vmatpush3.bf16.msra.mxu1 (!%p2123_p4), %v2562_v55 }
 0x370   : > { %v1510_v24 = vmax.f32 %v1489_v40, %v1493_v22  ;;  %v1491_v52 = vsel %vm1443_vm6, %v1338_v20, -1e+09  ;;  %v1505_v26 = vmax.f32 %v1503_v17, %v1496_v2  ;;  %v1499_v34 = vsel %vm1451_vm0, %v1346_v25, -1e+09  ;;  %2269 = vmatprep.subr.bf16.mxu0 (!%p2123_p4), %v2967_v19  ;;  %2199 = vmatprep.subr.bf16.mxu1 (!%p2123_p4), %v2563_v56  ;;  %v2567_v62 = vld [vmem:[#allocation17 + $0x20] sm:$0xff] (!%p2123_p4)   ;;  %v2569_v2 = vld [vmem:[#allocation16 + $0x68] sm:$0xff] (!%p2123_p4)  }
 0x371   : > { %v1504_v47 = vmax.f32 %v1502_v21, %v1494_v6  ;;  %v1509_v28 = vmax.f32 %v1487_v11, %v1491_v52  ;;  %v2568_v63 = vld [vmem:[#allocation16 + $0x20] sm:$0xff] (!%p2123_p4)   ;;  %v2571_v3 = vld [vmem:[#allocation16 + $0x28] sm:$0xff] (!%p2123_p4)   ;;  %v2573_v5 = vld [vmem:[#allocation17 + $0x30] sm:$0xff] (!%p2123_p4)  }
 0x372   : > { %v1512_v30 = vmax.f32 %v1510_v24, %v1497_v27  ;;  %v1507_v31 = vmax.f32 %v1505_v26, %v1500_v43  ;;  %v2574_v6 = vld [vmem:[#allocation16 + $0x30] sm:$0xff] (!%p2123_p4)   ;;  %v2575_v40 = vld [vmem:[#allocation16 + $0x78] sm:$0xff] (!%p2123_p4)   ;;  %v2150_v22 = vld [vmem:[%s3786_s18] ss:$0 sm:$0xff] (!%p2123_p4) }
 0x373   : > { %v1506_v32 = vmax.f32 %v1504_v47, %v1498_v29  ;;  %v1511_v46 = vmax.f32 %v1509_v28, %v1495_v51  ;;  %2270 = vmatpush3.bf16.msra.mxu0 (!%p2123_p4), %v2558_v49  ;;  %2200 = vmatpush3.bf16.msra.mxu1 (!%p2123_p4), %v2565_v60  ;;  %v2576_v8 = vld [vmem:[#allocation17 + $0x38] sm:$0xff] (!%p2123_p4)  }
 0x374   : > { %v1514_v15 = vmax.f32 %v1512_v30, %v1501_v33  ;;  %2271 = vmatprep.subr.bf16.mxu0 (!%p2123_p4), %v2967_v19  ;;  %2201 = vmatprep.subr.bf16.mxu1 (!%p2123_p4), %v2566_v61  ;;  %v2577_v11 = vld [vmem:[#allocation16 + $0x38] sm:$0xff] (!%p2123_p4)  }
 0x375   : > { %v1513_v35 = vmax.f32 %v1511_v46, %v1499_v34  ;;  %v1508_v36 = vmax.f32 %v1506_v32, %v1507_v31  ;;  %1525 = sbr.rel (%p2123_p4) target bundleno = 1131 (0x46b), region = 108  ;;  %v2578_v12 = vld [vmem:[%s3427_s2] ss:$8 sps:$4 sm:$0xff] (!%p2123_p4)  }
 0x377   : > { %v1515_v37 = vmax.f32 %v1513_v35, %v1514_v15  ;;  %v1518_v38 = vmax.f32 %v1516_v0, %v1508_v36  ;;  %2272 = vmatpush3.bf16.msra.mxu0 (!%p2123_p4), %v2561_v54  ;;  %2202 = vmatpush3.bf16.msra.mxu1 (!%p2123_p4), %v2568_v63 }
 0x378   : > { %2273 = vmatprep.subr.bf16.mxu0 (!%p2123_p4), %v2967_v19  ;;  %2203 = vmatprep.subr.bf16.mxu1 (!%p2123_p4), %v2569_v2 }
 0x379   : > { %v1519_v39 = vmax.f32 %v1517_v18, %v1515_v37  ;;  %1520 = vst [vmem:[#allocation4] sm:$0xff] %v1518_v38 }
 0x37b   : > { %1521 = vst [vmem:[#allocation4 + $0x8] sm:$0xff] %v1519_v39  ;;  %2274 = vmatpush3.bf16.msra.mxu0 (!%p2123_p4), %v2564_v59  ;;  %2204 = vmatpush3.bf16.msra.mxu1 (!%p2123_p4), %v2571_v3 }
 0x37c   : > { %2275 = vmatprep.subr.bf16.mxu0 %v2967_v19  ;;  %2205 = vmatprep.subr.bf16.mxu1 %v2572_v4 }
 0x37f   : > { %2276 = vmatpush3.bf16.msra.mxu0 %v2567_v62  ;;  %2206 = vmatpush3.bf16.msra.mxu1 %v2574_v6 }
 0x380   : > { %2277 = vmatprep.subr.bf16.mxu0 %v2967_v19  ;;  %v1560_v9 = vld [vmem:[#allocation4] sm:$0xff]  ;;  %2207 = vmatprep.subr.bf16.mxu1 %v2575_v40 }
 0x382   : > { %v1561_v10 = vld [vmem:[#allocation4 + $0x8] sm:$0xff] }
 0x383   : > { %2278 = vmatpush3.bf16.msra.mxu0 %v2570_v1  ;;  %v1562_v41 = vpack.c.bf16 %v1561_v10, %v1560_v9  ;;  %2208 = vmatpush3.bf16.msra.mxu1 %v2577_v11 }
 0x384   : > { %2279 = vmatprep.subr.bf16.mxu0 %v2967_v19 }
 0x386   : > { %1807 = vmatmul.mubr.bf16.vlgmr.msra.gmra.mrb[0].mxu1 %v2578_v12 }
 0x387   : > { %2280 = vmatpush3.bf16.msra.mxu0 %v2573_v5 }
 0x388   : > { %2281 = vmatprep.subr.bf16.mxu0 %v2967_v19 }
 0x38b   : > { %2282 = vmatpush3.bf16.msra.mxu0 %v2576_v8 }
 0x38e   : > { %2284 = vmatmul.mubr.bf16.vlgmr.msra.gmra.mrb[0].mxu0 %v1562_v41 }
 0x459   : > { %v2209_v14 = vpop.f32.mrb[0].mxu1 }
 0x45a   : > { %v2210_v17 = vpop.f32.mrb[1].mxu1 }
 0x45b   : > { %v2211_v42 = vadd.f32 %v2210_v17, %v2209_v14  ;;  %v2212_v20 = vpop.f32.mrb[2].mxu1 }
 0x45c   : > { %v2213_v23 = vpop.f32.mrb[3].mxu1 }
 0x45d   : > { %v2214_v24 = vadd.f32 %v2213_v23, %v2212_v20 }
 0x461   : > { %v1661_v13 = vpop.f32.mrb[0].mxu0 }
 0x462   : > { %v2285_v16 = vpop.f32.mrb[1].mxu0  ;;  %v1809_v43 = vadd.f32 %v2211_v42, %v1661_v13 }
 0x463   : > { %v1664_v58 = vpop.f32.mrb[2].mxu0 }
 0x464   : > { %v2286_v21 = vpop.f32.mrb[3].mxu0  ;;  %v1822_v52 = vadd.f32 %v2150_v22, %v1809_v43  ;;  %v1812_v25 = vadd.f32 %v2214_v24, %v1664_v58 }
 0x466   : > { %v1824_v26 = vmax.f32 %v1822_v52, 0.0  ;;  %v1823_v27 = vadd.f32 %v2150_v22, %v1812_v25 }
 0x468   : > { %1826 = vst [vmem:[%s3464_s22] sm:$0xff] %v1824_v26  ;;  %v1825_v47 = vmax.f32 %v1823_v27, 0.0 }
 0x46a   : > { %1827 = vst [vmem:[%s3464_s22 + $0x8] sm:$0xff] %v1825_v47 }
 0x46b PF: > { %s3787_s2 = sld [smem:[#allocation28_spill]]  ;;  %s3788_s14 = sld [smem:[#allocation47_spill]] }
 0x46c   : > { %s1842_s11 = sshll.u32 %s3464_s22, 4  ;;  %s1829_s27 = scalar_lea.sflag [#allocation7], %s3423_s7  ;;  %s3605_s11 = int_to_ptr.vmem [resolvable:$true] %s1842_s11 }
 0x46d   : > { %s2811_s0 = scalar_lea.vmem %s3605_s11, 256  ;;  %p3789_p12 = scmp.ne.s32.totalorder %s3755_s21, 0 }
 0x46e   : > { %p2812_p2 = scmp.ne.s32.totalorder %s3605_s11, %s2811_s0  ;;  %s2969_s1 = smov [#allocation19]  }
 0x46f   : > { %s2815_s3 = sshll.u32 %s2969_s1, 4  ;;  %s2816_s3 = int_to_ptr.vmem [resolvable:$false] %s2815_s3 }
 0x470   : > { %p2813_p9 = pnand %p2812_p2, %p3789_p12  ;;  %s2817_s12 = scalar_lea.vmem %s2816_s3, 512 }
 0x471   : > { %s2158_s28 = sshll.u32 %s3787_s2, 8  ;;  %p2818_p8 = scmp.lt.s32.totalorder %s3605_s11, %s2816_s3 }
 0x472   : > { %s3602_s17 = scalar_lea.hbm %s3788_s14, %s2158_s28  ;;  %p2814_p5 = pneg %p2813_p9 }
 0x473   : > { %p2819_p10 = scmp.lt.s32.totalorder %s2817_s12, %s2811_s0 }
 0x475   : > { %p2820_p11 = por %p2819_p10, %p2818_p8 }
 0x477   : > { %p2821_p6 = pnand %p2820_p11, %p2814_p5 }
 0x479   : > { %2824 = shalt.err (!%p2821_p6)
}
 0x47a   : > { %s2825_s22 = scalar_lea.hbm %s3602_s17, 256  ;;  %s2829_s6 = scalar_lea.hbm %s3788_s14, 512 }
 0x47b   : > { %p2826_p3 = scmp.ne.s32.totalorder %s3602_s17, %s2825_s22  ;;  %p2830_p1 = scmp.lt.u32.totalorder %s3602_s17, %s3788_s14 }
 0x47c   : > { %p2831_p7 = scmp.lt.u32.totalorder %s2829_s6, %s2825_s22  ;;  %p2833_p2 = scmp.lt.u32.totalorder %s2825_s22, %s3602_s17 }
 0x47d   : > { %p2827_p13 = pnand %p2826_p3, %p3789_p12 }
 0x47e   : > { %p2832_p4 = por %p2831_p7, %p2830_p1 }
 0x47f   : > { %p2828_p0 = pneg %p2827_p13 }
 0x480   : > { %p2834_p9 = por %p2833_p2, %p2832_p4 }
 0x482   : > { %p2835_p5 = pnand %p2834_p9, %p2828_p0 }
 0x484   : > { %2838 = shalt.err (!%p2835_p5)
}
 0x485   : > { %s2970_s16 = smov 128   ;;  %s2971_s18 = smov 8  }
 0x486   : > { %2329 = dma.vmem_to_hbm [thread:$0]  (%p3789_p12), %s3605_s11, 256, %s3602_s17, %s1829_s27, %s2970_s16, %s2970_s16, %s2971_s18  }
 0x487 PF: > { %p2372_p8 = scmp.ge.s32.totalorder %s2949_s13, 2  ;;  %s1857_s2 = sand.u32 1, %s2921_s24  }
 0x488   : > { %p3790_p10 = scmp.ne.s32.totalorder %s3756_s4, 0  ;;  %s1858_s28 = scalar_lea.sflag [#allocation7], %s1857_s2 }
 0x48a   : > { %p2358_p11 = pnand %p2372_p8, %p3790_p10 }
 0x48c   : > { %2904 = dma.done.wait (!%p2358_p11), %s1858_s28, 256  }
 0x48d   : > { %2906 = vsyncadd (!%p2358_p11), %s1858_s28, 4294967040  ;;  %s34_s13 = sadd.s32 1, %s2949_s13   ;;  %s3791_s21 = sld [smem:[#allocation26_spill]] }
 0x48e   : > { %p31_p6 = scmp.ge.s32.totalorder %s34_s13, 6   ;;  %s3792_s10 = sld [smem:[#allocation33_spill]] }
 0x48f   : > { %s3793_s7 = sld [smem:[#allocation34_spill]]  ;;  %s3794_s9 = sld [smem:[#allocation30_spill]] }
 0x490   : > { %s3795_s17 = sld [smem:[#allocation31_spill]]  ;;  %s3796_s22 = smov %s2917_s23 }
 0x491   : > { %s3798_s24 = smov %s2925_s25  ;;  %s3799_s25 = smov %s2929_s26 }
 0x492   : > { %s3801_s27 = smov %s2941_s29  ;;  %s3802_s28 = smov %s2945_s30 }
 0x493   :  { %33 = sbr.rel (!%p31_p6) target bundleno = 28 (0x1c), region = 169 }
 0x494   : > { %s3797_s23 = smov %s3792_s10 }
 0x495   : > { %s3800_s26 = smov %s3793_s7  ;;  %s3803_s29 = smov %s3794_s9 }
 0x496   : > { %s3804_s30 = smov %s3795_s17 }
 0x49a   :  { %1863 = vsyncpa [#allocation6], 1 }
 0x49b   :  { %1865 = vsyncpa [#allocation6 + $0x1], 1 }
 0x49c   :  { %1866 = vsyncpa [#allocation9], 1 }
 0x49d   :  { %1868 = vsyncpa [#allocation9 + $0x1], 1 }
 0x49e   :  { %1869 = vsyncpa [#allocation12], 1 }
 0x49f   :  { %1870 = vsyncpa [#allocation15], 1 }
 0x4a0   :  { %1871 = vsyncpa [#allocation18], 1 }
 0x4a1   :  { %1872 = vsyncpa [#allocation7], 1 }
 0x4a2   :  { %1874 = vsyncpa [#allocation7 + $0x1], 1 }

</bundles_post_ra>
